<compile_context>
chip_gen: v6e
topology: v6e:2x2x1
jax: 0.10.0
libtpu: 0.0.40
codegen_flags: <defaults>
</compile_context>

<pallas_src>
import functools

import jax
import jax.numpy as jnp
from jax.experimental import pallas as pl
from jax.experimental.pallas import tpu as pltpu

# ----- config (mirrors the `config` object the PyTorch module references) -----
VOCAB = 16          # len(config.num_sequence)
PAD = 0             # config.num_sequence.PAD
SOS = 1             # config.num_sequence.SOS
EMB = 32            # config.embedding_dim
HID = 32            # config.hidden_size
NUM_LAYER = 1       # config.num_layer
MAX_LEN = 6         # config.max_len  -> decode T = MAX_LEN + 2 steps
T_STEPS = MAX_LEN + 2

_CAT = 3 * HID + VOCAB                       # fused (W_hh | W_fc) output width
_CAT_PAD = ((_CAT + 127) // 128) * 128       # pad to a full 128-lane group


def _decoder_kernel(g_ref, wcat_ref, bcat_ref, h0_ref,
                    logp_ref, idx_ref, hout_ref,
                    *, sos, n_steps, hid, vocab):
    B = h0_ref.shape[0]
    H = hid
    V = vocab

    g_tab = g_ref[...]                                   # [V, 3H]  (emb @ W_ih^T + b_ih)
    w_cat = wcat_ref[...]                                # [H, 128] (W_hh^T | W_fc^T | 0-pad)
    # hoist the bias broadcast out of the loop (JAX does not CSE broadcast_in_dim)
    b_cat = jnp.broadcast_to(bcat_ref[...], (B, w_cat.shape[1]))   # [B, 128]

    iota_v = jax.lax.broadcasted_iota(jnp.int32, (B, V), 1)

    # ---- carried state lives in vregs, not VMEM scratch ----
    h = h0_ref[...]                                      # [B, H]
    # initial gh from h0 via the same fused matmul (logits lanes unused here)
    fused = jnp.dot(h, w_cat, preferred_element_type=jnp.float32) + b_cat
    gh = fused[:, : 3 * H]                               # [B, 3H] includes b_hh
    # SOS one-hot as the first decoder input
    onehot = (iota_v == jnp.int32(sos)).astype(jnp.float32)        # [B, V]

    # fully unrolled greedy decode (n_steps is small & static)
    for t in range(n_steps):
        # input gates: one-hot row-select of the pre-fused table (b_ih already folded in)
        gi = jnp.dot(onehot, g_tab, preferred_element_type=jnp.float32)   # [B, 3H]

        # r, z with a single 2H-wide sigmoid push
        rz = jax.nn.sigmoid(gi[:, : 2 * H] + gh[:, : 2 * H])
        r = rz[:, :H]
        z = rz[:, H: 2 * H]
        # b_hh_n stays inside gh (multiplied by r) -> exact PyTorch GRU semantics
        n = jnp.tanh(gi[:, 2 * H:] + r * gh[:, 2 * H:])
        h = (1.0 - z) * n + z * h                        # [B, H]

        # fused matmul on h_new: gh for the NEXT step + logits for THIS step
        fused = jnp.dot(h, w_cat, preferred_element_type=jnp.float32) + b_cat  # [B, 128]
        gh = fused[:, : 3 * H]
        logits = fused[:, 3 * H: 3 * H + V]              # [B, V]

        # greedy token straight from logits (argmax invariant under log_softmax,
        # min-index tie-break matches torch.topk first-occurrence)
        mx = jnp.max(logits, axis=-1, keepdims=True)
        cand = jnp.where(logits == mx, iota_v, V)
        idx = jnp.min(cand, axis=-1, keepdims=True).astype(jnp.int32)   # [B, 1]
        idx_ref[t] = idx
        onehot = (iota_v == idx).astype(jnp.float32)     # next step's input

        # log_softmax — off the feedback chain, overlapped with next step's matmuls
        s = logits - mx
        lse = jnp.log(jnp.sum(jnp.exp(s), axis=-1, keepdims=True))
        logp_ref[t] = s - lse

    hout_ref[...] = h


def make_params(key):
    ks = jax.random.split(key, 8)
    scale = 1.0 / jnp.sqrt(jnp.float32(HID))
    emb = jax.random.normal(ks[0], (VOCAB, EMB), jnp.float32) * 0.1
    emb = emb.at[PAD].set(0.0)                                   # padding_idx row = 0
    w_ih = jax.random.uniform(ks[1], (3 * HID, EMB), jnp.float32, -scale, scale)
    w_hh = jax.random.uniform(ks[2], (3 * HID, HID), jnp.float32, -scale, scale)
    b_ih = jax.random.uniform(ks[3], (3 * HID,), jnp.float32, -scale, scale)
    b_hh = jax.random.uniform(ks[4], (3 * HID,), jnp.float32, -scale, scale)
    w_fc = jax.random.uniform(ks[5], (VOCAB, HID), jnp.float32, -scale, scale)
    b_fc = jax.random.uniform(ks[6], (VOCAB,), jnp.float32, -scale, scale)
    return dict(emb=emb, w_ih=w_ih, w_hh=w_hh, b_ih=b_ih, b_hh=b_hh,
                w_fc=w_fc, b_fc=b_fc)


def decoder_forward(target, encoder_hidden, params):
    """target: [B, L] int (used only for batch size, greedy decode),
       encoder_hidden: [1, B, HID] f32 (num_layers=1)."""
    B = target.shape[0]
    h0 = encoder_hidden.reshape(B, HID).astype(jnp.float32)

    # ---- one-time fusions (outside the kernel, off the decode critical path) ----
    emb = params["emb"].astype(jnp.float32)                                    # [V, EMB]
    g_tab = emb @ params["w_ih"].T.astype(jnp.float32) \
        + params["b_ih"].astype(jnp.float32)[None, :]                          # [V, 3H]
    w_cat = jnp.concatenate([params["w_hh"].T.astype(jnp.float32),             # [H, 3H]
                             params["w_fc"].T.astype(jnp.float32)], axis=1)    # [H, 3H+V]
    b_cat = jnp.concatenate([params["b_hh"].astype(jnp.float32),
                             params["b_fc"].astype(jnp.float32)])              # [3H+V]
    w_cat = jnp.pad(w_cat, ((0, 0), (0, _CAT_PAD - _CAT)))                     # [H, 128]
    b_cat = jnp.pad(b_cat, (0, _CAT_PAD - _CAT)).reshape(1, _CAT_PAD)          # [1, 128]

    args = (g_tab, w_cat, b_cat, h0)

    vmem_spec = pl.BlockSpec(memory_space=pltpu.MemorySpace.VMEM)
    kernel = functools.partial(_decoder_kernel, sos=SOS, n_steps=T_STEPS,
                               hid=HID, vocab=VOCAB)

    logp, idx, h_final = pl.pallas_call(
        kernel,
        out_shape=(
            jax.ShapeDtypeStruct((T_STEPS, B, VOCAB), jnp.float32),
            jax.ShapeDtypeStruct((T_STEPS, B, 1), jnp.int32),
            jax.ShapeDtypeStruct((B, HID), jnp.float32),
        ),
        in_specs=[vmem_spec] * len(args),
        out_specs=(vmem_spec, vmem_spec, vmem_spec),
    )(*args)

    decoder_hidden = h_final.reshape(NUM_LAYER, B, HID)
    return logp, idx[..., 0], decoder_hidden


def decoder_reference(target, encoder_hidden, params):
    """Pure-JAX reference mirroring the PyTorch forward (greedy decode)."""
    B = target.shape[0]
    h = encoder_hidden.reshape(B, HID).astype(jnp.float32)
    ids = jnp.full((B,), SOS, jnp.int32)
    logps, idxs = [], []
    for _ in range(T_STEPS):
        x = params["emb"][ids]                                           # [B, EMB]
        gi = x @ params["w_ih"].T + params["b_ih"]
        gh = h @ params["w_hh"].T + params["b_hh"]
        r = jax.nn.sigmoid(gi[:, :HID] + gh[:, :HID])
        z = jax.nn.sigmoid(gi[:, HID:2 * HID] + gh[:, HID:2 * HID])
        n = jnp.tanh(gi[:, 2 * HID:] + r * gh[:, 2 * HID:])
        h = (1.0 - z) * n + z * h
        logits = h @ params["w_fc"].T + params["b_fc"]
        logps.append(jax.nn.log_softmax(logits, axis=-1))
        ids = jnp.argmax(logits, axis=-1).astype(jnp.int32)
        idxs.append(ids)
    return jnp.stack(logps), jnp.stack(idxs), h.reshape(NUM_LAYER, B, HID)


if __name__ == "__main__":
    key = jax.random.PRNGKey(0)
    pkey, tkey, hkey = jax.random.split(key, 3)

    params = make_params(pkey)

    B = 2
    # TODO(synk): `target` only supplies batch size (the PyTorch forward never
    # feeds target tokens back in — pure greedy decode), so it is unused beyond shape.
    target = jax.random.randint(tkey, (B, MAX_LEN), 0, VOCAB, dtype=jnp.int32)
    encoder_hidden = jax.random.normal(hkey, (NUM_LAYER, B, HID), jnp.float32)

    logp, idx, dec_hidden = decoder_forward(target, encoder_hidden, params)
    jax.block_until_ready((logp, idx, dec_hidden))

    assert logp.shape == (T_STEPS, B, VOCAB)
    assert idx.shape == (T_STEPS, B)
    assert dec_hidden.shape == (NUM_LAYER, B, HID)
    # log_softmax rows must (approximately) sum to 1 in prob space
    assert jnp.allclose(jnp.sum(jnp.exp(logp), axis=-1), 1.0, atol=1e-4)

    # numerical check against pure-JAX reference
    ref_logp, ref_idx, ref_hidden = decoder_reference(target, encoder_hidden, params)
    assert jnp.allclose(logp, ref_logp, atol=1e-3, rtol=1e-3)
    assert jnp.array_equal(idx, ref_idx)
    assert jnp.allclose(dec_hidden, ref_hidden, atol=1e-3, rtol=1e-3)

    print("KERNEL_OK")
</pallas_src>

<mosaic_0001>
module attributes {stable_mosaic.version = 11 : i64} {
  func.func @_decoder_kernel(%arg0: memref<16x96xf32, #tpu.memory_space<vmem>>, %arg1: memref<32x128xf32, #tpu.memory_space<vmem>>, %arg2: memref<1x128xf32, #tpu.memory_space<vmem>>, %arg3: memref<2x32xf32, #tpu.memory_space<vmem>>, %arg4: memref<8x2x16xf32, #tpu.memory_space<vmem>>, %arg5: memref<8x2x1xi32, #tpu.memory_space<vmem>>, %arg6: memref<2x32xf32, #tpu.memory_space<vmem>>) attributes {dimension_semantics = [], scalar_prefetch = 0 : i64, scratch_operands = 0 : i64, tpu.core_type = #tpu.core_type<tc>} {
    %c0 = arith.constant 0 : index
    %c0_0 = arith.constant 0 : index
    %0 = vector.load %arg0[%c0, %c0_0] : memref<16x96xf32, #tpu.memory_space<vmem>>, vector<16x96xf32>
    %c0_1 = arith.constant 0 : index
    %c0_2 = arith.constant 0 : index
    %1 = vector.load %arg1[%c0_1, %c0_2] : memref<32x128xf32, #tpu.memory_space<vmem>>, vector<32x128xf32>
    %c0_3 = arith.constant 0 : index
    %c0_4 = arith.constant 0 : index
    %2 = vector.load %arg2[%c0_3, %c0_4] : memref<1x128xf32, #tpu.memory_space<vmem>>, vector<1x128xf32>
    %3 = vector.shape_cast %2 : vector<1x128xf32> to vector<1x128xf32>
    %4 = vector.broadcast %3 : vector<1x128xf32> to vector<2x128xf32>
    %5 = tpu.iota {dimensions = array<i32: 1>} : vector<2x16xi32>
    %c0_5 = arith.constant 0 : index
    %c0_6 = arith.constant 0 : index
    %6 = vector.load %arg3[%c0_5, %c0_6] : memref<2x32xf32, #tpu.memory_space<vmem>>, vector<2x32xf32>
    %cst = arith.constant dense<0.000000e+00> : vector<2x128xf32>
    %7 = tpu.matmul %6, %1, %cst {dimension_numbers = #tpu.dot_dimension_numbers<[1], [0], [0], [1], [0, 0, 1, 1], [], []>} : vector<2x32xf32>, vector<32x128xf32>, vector<2x128xf32> -> vector<2x128xf32>
    %8 = arith.addf %7, %4 : vector<2x128xf32>
    %9 = vector.extract_strided_slice %8 {offsets = [0, 0], sizes = [2, 96], strides = [1, 1]} : vector<2x128xf32> to vector<2x96xf32>
    %c1_i32 = arith.constant 1 : i32
    %10 = vector.broadcast %c1_i32 : i32 to vector<2x16xi32>
    %11 = arith.cmpi eq, %5, %10 : vector<2x16xi32>
    %12 = arith.extui %11 : vector<2x16xi1> to vector<2x16xi32>
    %13 = arith.sitofp %12 : vector<2x16xi32> to vector<2x16xf32>
    %cst_7 = arith.constant dense<0.000000e+00> : vector<2x96xf32>
    %14 = tpu.matmul %13, %0, %cst_7 {dimension_numbers = #tpu.dot_dimension_numbers<[1], [0], [0], [1], [0, 0, 1, 1], [], []>} : vector<2x16xf32>, vector<16x96xf32>, vector<2x96xf32> -> vector<2x96xf32>
    %15 = vector.extract_strided_slice %14 {offsets = [0, 0], sizes = [2, 64], strides = [1, 1]} : vector<2x96xf32> to vector<2x64xf32>
    %16 = vector.extract_strided_slice %9 {offsets = [0, 0], sizes = [2, 64], strides = [1, 1]} : vector<2x96xf32> to vector<2x64xf32>
    %17 = arith.addf %15, %16 : vector<2x64xf32>
    %18 = arith.negf %17 : vector<2x64xf32>
    %19 = math.exp %18 : vector<2x64xf32>
    %cst_8 = arith.constant 1.000000e+00 : f32
    %20 = vector.broadcast %cst_8 : f32 to vector<2x64xf32>
    %21 = arith.addf %20, %19 : vector<2x64xf32>
    %22 = arith.divf %20, %21 : vector<2x64xf32>
    %23 = vector.extract_strided_slice %22 {offsets = [0, 0], sizes = [2, 32], strides = [1, 1]} : vector<2x64xf32> to vector<2x32xf32>
    %24 = vector.extract_strided_slice %22 {offsets = [0, 32], sizes = [2, 32], strides = [1, 1]} : vector<2x64xf32> to vector<2x32xf32>
    %25 = vector.extract_strided_slice %14 {offsets = [0, 64], sizes = [2, 32], strides = [1, 1]} : vector<2x96xf32> to vector<2x32xf32>
    %26 = vector.extract_strided_slice %9 {offsets = [0, 64], sizes = [2, 32], strides = [1, 1]} : vector<2x96xf32> to vector<2x32xf32>
    %27 = arith.mulf %23, %26 : vector<2x32xf32>
    %28 = arith.addf %25, %27 : vector<2x32xf32>
    %29 = math.tanh %28 : vector<2x32xf32>
    %cst_9 = arith.constant 1.000000e+00 : f32
    %30 = vector.broadcast %cst_9 : f32 to vector<2x32xf32>
    %31 = arith.subf %30, %24 : vector<2x32xf32>
    %32 = arith.mulf %31, %29 : vector<2x32xf32>
    %33 = arith.mulf %24, %6 : vector<2x32xf32>
    %34 = arith.addf %32, %33 : vector<2x32xf32>
    %cst_10 = arith.constant dense<0.000000e+00> : vector<2x128xf32>
    %35 = tpu.matmul %34, %1, %cst_10 {dimension_numbers = #tpu.dot_dimension_numbers<[1], [0], [0], [1], [0, 0, 1, 1], [], []>} : vector<2x32xf32>, vector<32x128xf32>, vector<2x128xf32> -> vector<2x128xf32>
    %36 = arith.addf %35, %4 : vector<2x128xf32>
    %37 = vector.extract_strided_slice %36 {offsets = [0, 0], sizes = [2, 96], strides = [1, 1]} : vector<2x128xf32> to vector<2x96xf32>
    %38 = vector.extract_strided_slice %36 {offsets = [0, 96], sizes = [2, 16], strides = [1, 1]} : vector<2x128xf32> to vector<2x16xf32>
    %cst_11 = arith.constant dense<0xFF800000> : vector<2xf32>
    %39 = vector.multi_reduction <maximumf>, %38, %cst_11 [1] : vector<2x16xf32> to vector<2xf32>
    %40 = vector.shape_cast %39 : vector<2xf32> to vector<2x1xf32>
    %41 = vector.broadcast %40 : vector<2x1xf32> to vector<2x16xf32>
    %42 = arith.cmpf oeq, %38, %41 : vector<2x16xf32>
    %c16_i32 = arith.constant 16 : i32
    %43 = vector.broadcast %c16_i32 : i32 to vector<2x16xi32>
    %44 = arith.select %42, %5, %43 : vector<2x16xi1>, vector<2x16xi32>
    %cst_12 = arith.constant dense<2147483647> : vector<2xi32>
    %45 = vector.multi_reduction <minsi>, %44, %cst_12 [1] : vector<2x16xi32> to vector<2xi32>
    %46 = vector.shape_cast %45 : vector<2xi32> to vector<2x1xi32>
    %c0_13 = arith.constant 0 : index
    %c0_14 = arith.constant 0 : index
    %c0_15 = arith.constant 0 : index
    %47 = vector.load %arg5[%c0_13, %c0_14, %c0_15] : memref<8x2x1xi32, #tpu.memory_space<vmem>>, vector<1x2x1xi32>
    %48 = vector.shape_cast %47 : vector<1x2x1xi32> to vector<2x1xi32>
    %49 = vector.shape_cast %46 : vector<2x1xi32> to vector<1x2x1xi32>
    tpu.vector_store %arg5[%c0_13, %c0_14, %c0_15], %49 {strides = array<i32>} : memref<8x2x1xi32, #tpu.memory_space<vmem>>, vector<1x2x1xi32>,
    %50 = vector.broadcast %46 : vector<2x1xi32> to vector<2x16xi32>
    %51 = arith.cmpi eq, %5, %50 : vector<2x16xi32>
    %52 = arith.extui %51 : vector<2x16xi1> to vector<2x16xi32>
    %53 = arith.sitofp %52 : vector<2x16xi32> to vector<2x16xf32>
    %54 = vector.broadcast %40 : vector<2x1xf32> to vector<2x16xf32>
    %55 = arith.subf %38, %54 : vector<2x16xf32>
    %56 = math.exp %55 : vector<2x16xf32>
    %cst_16 = arith.constant dense<0.000000e+00> : vector<2xf32>
    %57 = vector.multi_reduction <add>, %56, %cst_16 [1] : vector<2x16xf32> to vector<2xf32>
    %58 = vector.shape_cast %57 : vector<2xf32> to vector<2x1xf32>
    %59 = math.log %58 : vector<2x1xf32>
    %60 = vector.broadcast %59 : vector<2x1xf32> to vector<2x16xf32>
    %61 = arith.subf %55, %60 : vector<2x16xf32>
    %c0_17 = arith.constant 0 : index
    %c0_18 = arith.constant 0 : index
    %c0_19 = arith.constant 0 : index
    %62 = vector.load %arg4[%c0_17, %c0_18, %c0_19] : memref<8x2x16xf32, #tpu.memory_space<vmem>>, vector<1x2x16xf32>
    %63 = vector.shape_cast %62 : vector<1x2x16xf32> to vector<2x16xf32>
    %64 = vector.shape_cast %61 : vector<2x16xf32> to vector<1x2x16xf32>
    tpu.vector_store %arg4[%c0_17, %c0_18, %c0_19], %64 {strides = array<i32>} : memref<8x2x16xf32, #tpu.memory_space<vmem>>, vector<1x2x16xf32>,
    %cst_20 = arith.constant dense<0.000000e+00> : vector<2x96xf32>
    %65 = tpu.matmul %53, %0, %cst_20 {dimension_numbers = #tpu.dot_dimension_numbers<[1], [0], [0], [1], [0, 0, 1, 1], [], []>} : vector<2x16xf32>, vector<16x96xf32>, vector<2x96xf32> -> vector<2x96xf32>
    %66 = vector.extract_strided_slice %65 {offsets = [0, 0], sizes = [2, 64], strides = [1, 1]} : vector<2x96xf32> to vector<2x64xf32>
    %67 = vector.extract_strided_slice %37 {offsets = [0, 0], sizes = [2, 64], strides = [1, 1]} : vector<2x96xf32> to vector<2x64xf32>
    %68 = arith.addf %66, %67 : vector<2x64xf32>
    %69 = arith.negf %68 : vector<2x64xf32>
    %70 = math.exp %69 : vector<2x64xf32>
    %cst_21 = arith.constant 1.000000e+00 : f32
    %71 = vector.broadcast %cst_21 : f32 to vector<2x64xf32>
    %72 = arith.addf %71, %70 : vector<2x64xf32>
    %73 = arith.divf %71, %72 : vector<2x64xf32>
    %74 = vector.extract_strided_slice %73 {offsets = [0, 0], sizes = [2, 32], strides = [1, 1]} : vector<2x64xf32> to vector<2x32xf32>
    %75 = vector.extract_strided_slice %73 {offsets = [0, 32], sizes = [2, 32], strides = [1, 1]} : vector<2x64xf32> to vector<2x32xf32>
    %76 = vector.extract_strided_slice %65 {offsets = [0, 64], sizes = [2, 32], strides = [1, 1]} : vector<2x96xf32> to vector<2x32xf32>
    %77 = vector.extract_strided_slice %37 {offsets = [0, 64], sizes = [2, 32], strides = [1, 1]} : vector<2x96xf32> to vector<2x32xf32>
    %78 = arith.mulf %74, %77 : vector<2x32xf32>
    %79 = arith.addf %76, %78 : vector<2x32xf32>
    %80 = math.tanh %79 : vector<2x32xf32>
    %cst_22 = arith.constant 1.000000e+00 : f32
    %81 = vector.broadcast %cst_22 : f32 to vector<2x32xf32>
    %82 = arith.subf %81, %75 : vector<2x32xf32>
    %83 = arith.mulf %82, %80 : vector<2x32xf32>
    %84 = arith.mulf %75, %34 : vector<2x32xf32>
    %85 = arith.addf %83, %84 : vector<2x32xf32>
    %cst_23 = arith.constant dense<0.000000e+00> : vector<2x128xf32>
    %86 = tpu.matmul %85, %1, %cst_23 {dimension_numbers = #tpu.dot_dimension_numbers<[1], [0], [0], [1], [0, 0, 1, 1], [], []>} : vector<2x32xf32>, vector<32x128xf32>, vector<2x128xf32> -> vector<2x128xf32>
    %87 = arith.addf %86, %4 : vector<2x128xf32>
    %88 = vector.extract_strided_slice %87 {offsets = [0, 0], sizes = [2, 96], strides = [1, 1]} : vector<2x128xf32> to vector<2x96xf32>
    %89 = vector.extract_strided_slice %87 {offsets = [0, 96], sizes = [2, 16], strides = [1, 1]} : vector<2x128xf32> to vector<2x16xf32>
    %cst_24 = arith.constant dense<0xFF800000> : vector<2xf32>
    %90 = vector.multi_reduction <maximumf>, %89, %cst_24 [1] : vector<2x16xf32> to vector<2xf32>
    %91 = vector.shape_cast %90 : vector<2xf32> to vector<2x1xf32>
    %92 = vector.broadcast %91 : vector<2x1xf32> to vector<2x16xf32>
    %93 = arith.cmpf oeq, %89, %92 : vector<2x16xf32>
    %c16_i32_25 = arith.constant 16 : i32
    %94 = vector.broadcast %c16_i32_25 : i32 to vector<2x16xi32>
    %95 = arith.select %93, %5, %94 : vector<2x16xi1>, vector<2x16xi32>
    %cst_26 = arith.constant dense<2147483647> : vector<2xi32>
    %96 = vector.multi_reduction <minsi>, %95, %cst_26 [1] : vector<2x16xi32> to vector<2xi32>
    %97 = vector.shape_cast %96 : vector<2xi32> to vector<2x1xi32>
    %c1 = arith.constant 1 : index
    %c0_27 = arith.constant 0 : index
    %c0_28 = arith.constant 0 : index
    %98 = vector.load %arg5[%c1, %c0_27, %c0_28] : memref<8x2x1xi32, #tpu.memory_space<vmem>>, vector<1x2x1xi32>
    %99 = vector.shape_cast %98 : vector<1x2x1xi32> to vector<2x1xi32>
    %100 = vector.shape_cast %97 : vector<2x1xi32> to vector<1x2x1xi32>
    tpu.vector_store %arg5[%c1, %c0_27, %c0_28], %100 {strides = array<i32>} : memref<8x2x1xi32, #tpu.memory_space<vmem>>, vector<1x2x1xi32>,
    %101 = vector.broadcast %97 : vector<2x1xi32> to vector<2x16xi32>
    %102 = arith.cmpi eq, %5, %101 : vector<2x16xi32>
    %103 = arith.extui %102 : vector<2x16xi1> to vector<2x16xi32>
    %104 = arith.sitofp %103 : vector<2x16xi32> to vector<2x16xf32>
    %105 = vector.broadcast %91 : vector<2x1xf32> to vector<2x16xf32>
    %106 = arith.subf %89, %105 : vector<2x16xf32>
    %107 = math.exp %106 : vector<2x16xf32>
    %cst_29 = arith.constant dense<0.000000e+00> : vector<2xf32>
    %108 = vector.multi_reduction <add>, %107, %cst_29 [1] : vector<2x16xf32> to vector<2xf32>
    %109 = vector.shape_cast %108 : vector<2xf32> to vector<2x1xf32>
    %110 = math.log %109 : vector<2x1xf32>
    %111 = vector.broadcast %110 : vector<2x1xf32> to vector<2x16xf32>
    %112 = arith.subf %106, %111 : vector<2x16xf32>
    %c1_30 = arith.constant 1 : index
    %c0_31 = arith.constant 0 : index
    %c0_32 = arith.constant 0 : index
    %113 = vector.load %arg4[%c1_30, %c0_31, %c0_32] : memref<8x2x16xf32, #tpu.memory_space<vmem>>, vector<1x2x16xf32>
    %114 = vector.shape_cast %113 : vector<1x2x16xf32> to vector<2x16xf32>
    %115 = vector.shape_cast %112 : vector<2x16xf32> to vector<1x2x16xf32>
    tpu.vector_store %arg4[%c1_30, %c0_31, %c0_32], %115 {strides = array<i32>} : memref<8x2x16xf32, #tpu.memory_space<vmem>>, vector<1x2x16xf32>,
    %cst_33 = arith.constant dense<0.000000e+00> : vector<2x96xf32>
    %116 = tpu.matmul %104, %0, %cst_33 {dimension_numbers = #tpu.dot_dimension_numbers<[1], [0], [0], [1], [0, 0, 1, 1], [], []>} : vector<2x16xf32>, vector<16x96xf32>, vector<2x96xf32> -> vector<2x96xf32>
    %117 = vector.extract_strided_slice %116 {offsets = [0, 0], sizes = [2, 64], strides = [1, 1]} : vector<2x96xf32> to vector<2x64xf32>
    %118 = vector.extract_strided_slice %88 {offsets = [0, 0], sizes = [2, 64], strides = [1, 1]} : vector<2x96xf32> to vector<2x64xf32>
    %119 = arith.addf %117, %118 : vector<2x64xf32>
    %120 = arith.negf %119 : vector<2x64xf32>
    %121 = math.exp %120 : vector<2x64xf32>
    %cst_34 = arith.constant 1.000000e+00 : f32
    %122 = vector.broadcast %cst_34 : f32 to vector<2x64xf32>
    %123 = arith.addf %122, %121 : vector<2x64xf32>
    %124 = arith.divf %122, %123 : vector<2x64xf32>
    %125 = vector.extract_strided_slice %124 {offsets = [0, 0], sizes = [2, 32], strides = [1, 1]} : vector<2x64xf32> to vector<2x32xf32>
    %126 = vector.extract_strided_slice %124 {offsets = [0, 32], sizes = [2, 32], strides = [1, 1]} : vector<2x64xf32> to vector<2x32xf32>
    %127 = vector.extract_strided_slice %116 {offsets = [0, 64], sizes = [2, 32], strides = [1, 1]} : vector<2x96xf32> to vector<2x32xf32>
    %128 = vector.extract_strided_slice %88 {offsets = [0, 64], sizes = [2, 32], strides = [1, 1]} : vector<2x96xf32> to vector<2x32xf32>
    %129 = arith.mulf %125, %128 : vector<2x32xf32>
    %130 = arith.addf %127, %129 : vector<2x32xf32>
    %131 = math.tanh %130 : vector<2x32xf32>
    %cst_35 = arith.constant 1.000000e+00 : f32
    %132 = vector.broadcast %cst_35 : f32 to vector<2x32xf32>
    %133 = arith.subf %132, %126 : vector<2x32xf32>
    %134 = arith.mulf %133, %131 : vector<2x32xf32>
    %135 = arith.mulf %126, %85 : vector<2x32xf32>
    %136 = arith.addf %134, %135 : vector<2x32xf32>
    %cst_36 = arith.constant dense<0.000000e+00> : vector<2x128xf32>
    %137 = tpu.matmul %136, %1, %cst_36 {dimension_numbers = #tpu.dot_dimension_numbers<[1], [0], [0], [1], [0, 0, 1, 1], [], []>} : vector<2x32xf32>, vector<32x128xf32>, vector<2x128xf32> -> vector<2x128xf32>
    %138 = arith.addf %137, %4 : vector<2x128xf32>
    %139 = vector.extract_strided_slice %138 {offsets = [0, 0], sizes = [2, 96], strides = [1, 1]} : vector<2x128xf32> to vector<2x96xf32>
    %140 = vector.extract_strided_slice %138 {offsets = [0, 96], sizes = [2, 16], strides = [1, 1]} : vector<2x128xf32> to vector<2x16xf32>
    %cst_37 = arith.constant dense<0xFF800000> : vector<2xf32>
    %141 = vector.multi_reduction <maximumf>, %140, %cst_37 [1] : vector<2x16xf32> to vector<2xf32>
    %142 = vector.shape_cast %141 : vector<2xf32> to vector<2x1xf32>
    %143 = vector.broadcast %142 : vector<2x1xf32> to vector<2x16xf32>
    %144 = arith.cmpf oeq, %140, %143 : vector<2x16xf32>
    %c16_i32_38 = arith.constant 16 : i32
    %145 = vector.broadcast %c16_i32_38 : i32 to vector<2x16xi32>
    %146 = arith.select %144, %5, %145 : vector<2x16xi1>, vector<2x16xi32>
    %cst_39 = arith.constant dense<2147483647> : vector<2xi32>
    %147 = vector.multi_reduction <minsi>, %146, %cst_39 [1] : vector<2x16xi32> to vector<2xi32>
    %148 = vector.shape_cast %147 : vector<2xi32> to vector<2x1xi32>
    %c2 = arith.constant 2 : index
    %c0_40 = arith.constant 0 : index
    %c0_41 = arith.constant 0 : index
    %149 = vector.load %arg5[%c2, %c0_40, %c0_41] : memref<8x2x1xi32, #tpu.memory_space<vmem>>, vector<1x2x1xi32>
    %150 = vector.shape_cast %149 : vector<1x2x1xi32> to vector<2x1xi32>
    %151 = vector.shape_cast %148 : vector<2x1xi32> to vector<1x2x1xi32>
    tpu.vector_store %arg5[%c2, %c0_40, %c0_41], %151 {strides = array<i32>} : memref<8x2x1xi32, #tpu.memory_space<vmem>>, vector<1x2x1xi32>,
    %152 = vector.broadcast %148 : vector<2x1xi32> to vector<2x16xi32>
    %153 = arith.cmpi eq, %5, %152 : vector<2x16xi32>
    %154 = arith.extui %153 : vector<2x16xi1> to vector<2x16xi32>
    %155 = arith.sitofp %154 : vector<2x16xi32> to vector<2x16xf32>
    %156 = vector.broadcast %142 : vector<2x1xf32> to vector<2x16xf32>
    %157 = arith.subf %140, %156 : vector<2x16xf32>
    %158 = math.exp %157 : vector<2x16xf32>
    %cst_42 = arith.constant dense<0.000000e+00> : vector<2xf32>
    %159 = vector.multi_reduction <add>, %158, %cst_42 [1] : vector<2x16xf32> to vector<2xf32>
    %160 = vector.shape_cast %159 : vector<2xf32> to vector<2x1xf32>
    %161 = math.log %160 : vector<2x1xf32>
    %162 = vector.broadcast %161 : vector<2x1xf32> to vector<2x16xf32>
    %163 = arith.subf %157, %162 : vector<2x16xf32>
    %c2_43 = arith.constant 2 : index
    %c0_44 = arith.constant 0 : index
    %c0_45 = arith.constant 0 : index
    %164 = vector.load %arg4[%c2_43, %c0_44, %c0_45] : memref<8x2x16xf32, #tpu.memory_space<vmem>>, vector<1x2x16xf32>
    %165 = vector.shape_cast %164 : vector<1x2x16xf32> to vector<2x16xf32>
    %166 = vector.shape_cast %163 : vector<2x16xf32> to vector<1x2x16xf32>
    tpu.vector_store %arg4[%c2_43, %c0_44, %c0_45], %166 {strides = array<i32>} : memref<8x2x16xf32, #tpu.memory_space<vmem>>, vector<1x2x16xf32>,
    %cst_46 = arith.constant dense<0.000000e+00> : vector<2x96xf32>
    %167 = tpu.matmul %155, %0, %cst_46 {dimension_numbers = #tpu.dot_dimension_numbers<[1], [0], [0], [1], [0, 0, 1, 1], [], []>} : vector<2x16xf32>, vector<16x96xf32>, vector<2x96xf32> -> vector<2x96xf32>
    %168 = vector.extract_strided_slice %167 {offsets = [0, 0], sizes = [2, 64], strides = [1, 1]} : vector<2x96xf32> to vector<2x64xf32>
    %169 = vector.extract_strided_slice %139 {offsets = [0, 0], sizes = [2, 64], strides = [1, 1]} : vector<2x96xf32> to vector<2x64xf32>
    %170 = arith.addf %168, %169 : vector<2x64xf32>
    %171 = arith.negf %170 : vector<2x64xf32>
    %172 = math.exp %171 : vector<2x64xf32>
    %cst_47 = arith.constant 1.000000e+00 : f32
    %173 = vector.broadcast %cst_47 : f32 to vector<2x64xf32>
    %174 = arith.addf %173, %172 : vector<2x64xf32>
    %175 = arith.divf %173, %174 : vector<2x64xf32>
    %176 = vector.extract_strided_slice %175 {offsets = [0, 0], sizes = [2, 32], strides = [1, 1]} : vector<2x64xf32> to vector<2x32xf32>
    %177 = vector.extract_strided_slice %175 {offsets = [0, 32], sizes = [2, 32], strides = [1, 1]} : vector<2x64xf32> to vector<2x32xf32>
    %178 = vector.extract_strided_slice %167 {offsets = [0, 64], sizes = [2, 32], strides = [1, 1]} : vector<2x96xf32> to vector<2x32xf32>
    %179 = vector.extract_strided_slice %139 {offsets = [0, 64], sizes = [2, 32], strides = [1, 1]} : vector<2x96xf32> to vector<2x32xf32>
    %180 = arith.mulf %176, %179 : vector<2x32xf32>
    %181 = arith.addf %178, %180 : vector<2x32xf32>
    %182 = math.tanh %181 : vector<2x32xf32>
    %cst_48 = arith.constant 1.000000e+00 : f32
    %183 = vector.broadcast %cst_48 : f32 to vector<2x32xf32>
    %184 = arith.subf %183, %177 : vector<2x32xf32>
    %185 = arith.mulf %184, %182 : vector<2x32xf32>
    %186 = arith.mulf %177, %136 : vector<2x32xf32>
    %187 = arith.addf %185, %186 : vector<2x32xf32>
    %cst_49 = arith.constant dense<0.000000e+00> : vector<2x128xf32>
    %188 = tpu.matmul %187, %1, %cst_49 {dimension_numbers = #tpu.dot_dimension_numbers<[1], [0], [0], [1], [0, 0, 1, 1], [], []>} : vector<2x32xf32>, vector<32x128xf32>, vector<2x128xf32> -> vector<2x128xf32>
    %189 = arith.addf %188, %4 : vector<2x128xf32>
    %190 = vector.extract_strided_slice %189 {offsets = [0, 0], sizes = [2, 96], strides = [1, 1]} : vector<2x128xf32> to vector<2x96xf32>
    %191 = vector.extract_strided_slice %189 {offsets = [0, 96], sizes = [2, 16], strides = [1, 1]} : vector<2x128xf32> to vector<2x16xf32>
    %cst_50 = arith.constant dense<0xFF800000> : vector<2xf32>
    %192 = vector.multi_reduction <maximumf>, %191, %cst_50 [1] : vector<2x16xf32> to vector<2xf32>
    %193 = vector.shape_cast %192 : vector<2xf32> to vector<2x1xf32>
    %194 = vector.broadcast %193 : vector<2x1xf32> to vector<2x16xf32>
    %195 = arith.cmpf oeq, %191, %194 : vector<2x16xf32>
    %c16_i32_51 = arith.constant 16 : i32
    %196 = vector.broadcast %c16_i32_51 : i32 to vector<2x16xi32>
    %197 = arith.select %195, %5, %196 : vector<2x16xi1>, vector<2x16xi32>
    %cst_52 = arith.constant dense<2147483647> : vector<2xi32>
    %198 = vector.multi_reduction <minsi>, %197, %cst_52 [1] : vector<2x16xi32> to vector<2xi32>
    %199 = vector.shape_cast %198 : vector<2xi32> to vector<2x1xi32>
    %c3 = arith.constant 3 : index
    %c0_53 = arith.constant 0 : index
    %c0_54 = arith.constant 0 : index
    %200 = vector.load %arg5[%c3, %c0_53, %c0_54] : memref<8x2x1xi32, #tpu.memory_space<vmem>>, vector<1x2x1xi32>
    %201 = vector.shape_cast %200 : vector<1x2x1xi32> to vector<2x1xi32>
    %202 = vector.shape_cast %199 : vector<2x1xi32> to vector<1x2x1xi32>
    tpu.vector_store %arg5[%c3, %c0_53, %c0_54], %202 {strides = array<i32>} : memref<8x2x1xi32, #tpu.memory_space<vmem>>, vector<1x2x1xi32>,
    %203 = vector.broadcast %199 : vector<2x1xi32> to vector<2x16xi32>
    %204 = arith.cmpi eq, %5, %203 : vector<2x16xi32>
    %205 = arith.extui %204 : vector<2x16xi1> to vector<2x16xi32>
    %206 = arith.sitofp %205 : vector<2x16xi32> to vector<2x16xf32>
    %207 = vector.broadcast %193 : vector<2x1xf32> to vector<2x16xf32>
    %208 = arith.subf %191, %207 : vector<2x16xf32>
    %209 = math.exp %208 : vector<2x16xf32>
    %cst_55 = arith.constant dense<0.000000e+00> : vector<2xf32>
    %210 = vector.multi_reduction <add>, %209, %cst_55 [1] : vector<2x16xf32> to vector<2xf32>
    %211 = vector.shape_cast %210 : vector<2xf32> to vector<2x1xf32>
    %212 = math.log %211 : vector<2x1xf32>
    %213 = vector.broadcast %212 : vector<2x1xf32> to vector<2x16xf32>
    %214 = arith.subf %208, %213 : vector<2x16xf32>
    %c3_56 = arith.constant 3 : index
    %c0_57 = arith.constant 0 : index
    %c0_58 = arith.constant 0 : index
    %215 = vector.load %arg4[%c3_56, %c0_57, %c0_58] : memref<8x2x16xf32, #tpu.memory_space<vmem>>, vector<1x2x16xf32>
    %216 = vector.shape_cast %215 : vector<1x2x16xf32> to vector<2x16xf32>
    %217 = vector.shape_cast %214 : vector<2x16xf32> to vector<1x2x16xf32>
    tpu.vector_store %arg4[%c3_56, %c0_57, %c0_58], %217 {strides = array<i32>} : memref<8x2x16xf32, #tpu.memory_space<vmem>>, vector<1x2x16xf32>,
    %cst_59 = arith.constant dense<0.000000e+00> : vector<2x96xf32>
    %218 = tpu.matmul %206, %0, %cst_59 {dimension_numbers = #tpu.dot_dimension_numbers<[1], [0], [0], [1], [0, 0, 1, 1], [], []>} : vector<2x16xf32>, vector<16x96xf32>, vector<2x96xf32> -> vector<2x96xf32>
    %219 = vector.extract_strided_slice %218 {offsets = [0, 0], sizes = [2, 64], strides = [1, 1]} : vector<2x96xf32> to vector<2x64xf32>
    %220 = vector.extract_strided_slice %190 {offsets = [0, 0], sizes = [2, 64], strides = [1, 1]} : vector<2x96xf32> to vector<2x64xf32>
    %221 = arith.addf %219, %220 : vector<2x64xf32>
    %222 = arith.negf %221 : vector<2x64xf32>
    %223 = math.exp %222 : vector<2x64xf32>
    %cst_60 = arith.constant 1.000000e+00 : f32
    %224 = vector.broadcast %cst_60 : f32 to vector<2x64xf32>
    %225 = arith.addf %224, %223 : vector<2x64xf32>
    %226 = arith.divf %224, %225 : vector<2x64xf32>
    %227 = vector.extract_strided_slice %226 {offsets = [0, 0], sizes = [2, 32], strides = [1, 1]} : vector<2x64xf32> to vector<2x32xf32>
    %228 = vector.extract_strided_slice %226 {offsets = [0, 32], sizes = [2, 32], strides = [1, 1]} : vector<2x64xf32> to vector<2x32xf32>
    %229 = vector.extract_strided_slice %218 {offsets = [0, 64], sizes = [2, 32], strides = [1, 1]} : vector<2x96xf32> to vector<2x32xf32>
    %230 = vector.extract_strided_slice %190 {offsets = [0, 64], sizes = [2, 32], strides = [1, 1]} : vector<2x96xf32> to vector<2x32xf32>
    %231 = arith.mulf %227, %230 : vector<2x32xf32>
    %232 = arith.addf %229, %231 : vector<2x32xf32>
    %233 = math.tanh %232 : vector<2x32xf32>
    %cst_61 = arith.constant 1.000000e+00 : f32
    %234 = vector.broadcast %cst_61 : f32 to vector<2x32xf32>
    %235 = arith.subf %234, %228 : vector<2x32xf32>
    %236 = arith.mulf %235, %233 : vector<2x32xf32>
    %237 = arith.mulf %228, %187 : vector<2x32xf32>
    %238 = arith.addf %236, %237 : vector<2x32xf32>
    %cst_62 = arith.constant dense<0.000000e+00> : vector<2x128xf32>
    %239 = tpu.matmul %238, %1, %cst_62 {dimension_numbers = #tpu.dot_dimension_numbers<[1], [0], [0], [1], [0, 0, 1, 1], [], []>} : vector<2x32xf32>, vector<32x128xf32>, vector<2x128xf32> -> vector<2x128xf32>
    %240 = arith.addf %239, %4 : vector<2x128xf32>
    %241 = vector.extract_strided_slice %240 {offsets = [0, 0], sizes = [2, 96], strides = [1, 1]} : vector<2x128xf32> to vector<2x96xf32>
    %242 = vector.extract_strided_slice %240 {offsets = [0, 96], sizes = [2, 16], strides = [1, 1]} : vector<2x128xf32> to vector<2x16xf32>
    %cst_63 = arith.constant dense<0xFF800000> : vector<2xf32>
    %243 = vector.multi_reduction <maximumf>, %242, %cst_63 [1] : vector<2x16xf32> to vector<2xf32>
    %244 = vector.shape_cast %243 : vector<2xf32> to vector<2x1xf32>
    %245 = vector.broadcast %244 : vector<2x1xf32> to vector<2x16xf32>
    %246 = arith.cmpf oeq, %242, %245 : vector<2x16xf32>
    %c16_i32_64 = arith.constant 16 : i32
    %247 = vector.broadcast %c16_i32_64 : i32 to vector<2x16xi32>
    %248 = arith.select %246, %5, %247 : vector<2x16xi1>, vector<2x16xi32>
    %cst_65 = arith.constant dense<2147483647> : vector<2xi32>
    %249 = vector.multi_reduction <minsi>, %248, %cst_65 [1] : vector<2x16xi32> to vector<2xi32>
    %250 = vector.shape_cast %249 : vector<2xi32> to vector<2x1xi32>
    %c4 = arith.constant 4 : index
    %c0_66 = arith.constant 0 : index
    %c0_67 = arith.constant 0 : index
    %251 = vector.load %arg5[%c4, %c0_66, %c0_67] : memref<8x2x1xi32, #tpu.memory_space<vmem>>, vector<1x2x1xi32>
    %252 = vector.shape_cast %251 : vector<1x2x1xi32> to vector<2x1xi32>
    %253 = vector.shape_cast %250 : vector<2x1xi32> to vector<1x2x1xi32>
    tpu.vector_store %arg5[%c4, %c0_66, %c0_67], %253 {strides = array<i32>} : memref<8x2x1xi32, #tpu.memory_space<vmem>>, vector<1x2x1xi32>,
    %254 = vector.broadcast %250 : vector<2x1xi32> to vector<2x16xi32>
    %255 = arith.cmpi eq, %5, %254 : vector<2x16xi32>
    %256 = arith.extui %255 : vector<2x16xi1> to vector<2x16xi32>
    %257 = arith.sitofp %256 : vector<2x16xi32> to vector<2x16xf32>
    %258 = vector.broadcast %244 : vector<2x1xf32> to vector<2x16xf32>
    %259 = arith.subf %242, %258 : vector<2x16xf32>
    %260 = math.exp %259 : vector<2x16xf32>
    %cst_68 = arith.constant dense<0.000000e+00> : vector<2xf32>
    %261 = vector.multi_reduction <add>, %260, %cst_68 [1] : vector<2x16xf32> to vector<2xf32>
    %262 = vector.shape_cast %261 : vector<2xf32> to vector<2x1xf32>
    %263 = math.log %262 : vector<2x1xf32>
    %264 = vector.broadcast %263 : vector<2x1xf32> to vector<2x16xf32>
    %265 = arith.subf %259, %264 : vector<2x16xf32>
    %c4_69 = arith.constant 4 : index
    %c0_70 = arith.constant 0 : index
    %c0_71 = arith.constant 0 : index
    %266 = vector.load %arg4[%c4_69, %c0_70, %c0_71] : memref<8x2x16xf32, #tpu.memory_space<vmem>>, vector<1x2x16xf32>
    %267 = vector.shape_cast %266 : vector<1x2x16xf32> to vector<2x16xf32>
    %268 = vector.shape_cast %265 : vector<2x16xf32> to vector<1x2x16xf32>
    tpu.vector_store %arg4[%c4_69, %c0_70, %c0_71], %268 {strides = array<i32>} : memref<8x2x16xf32, #tpu.memory_space<vmem>>, vector<1x2x16xf32>,
    %cst_72 = arith.constant dense<0.000000e+00> : vector<2x96xf32>
    %269 = tpu.matmul %257, %0, %cst_72 {dimension_numbers = #tpu.dot_dimension_numbers<[1], [0], [0], [1], [0, 0, 1, 1], [], []>} : vector<2x16xf32>, vector<16x96xf32>, vector<2x96xf32> -> vector<2x96xf32>
    %270 = vector.extract_strided_slice %269 {offsets = [0, 0], sizes = [2, 64], strides = [1, 1]} : vector<2x96xf32> to vector<2x64xf32>
    %271 = vector.extract_strided_slice %241 {offsets = [0, 0], sizes = [2, 64], strides = [1, 1]} : vector<2x96xf32> to vector<2x64xf32>
    %272 = arith.addf %270, %271 : vector<2x64xf32>
    %273 = arith.negf %272 : vector<2x64xf32>
    %274 = math.exp %273 : vector<2x64xf32>
    %cst_73 = arith.constant 1.000000e+00 : f32
    %275 = vector.broadcast %cst_73 : f32 to vector<2x64xf32>
    %276 = arith.addf %275, %274 : vector<2x64xf32>
    %277 = arith.divf %275, %276 : vector<2x64xf32>
    %278 = vector.extract_strided_slice %277 {offsets = [0, 0], sizes = [2, 32], strides = [1, 1]} : vector<2x64xf32> to vector<2x32xf32>
    %279 = vector.extract_strided_slice %277 {offsets = [0, 32], sizes = [2, 32], strides = [1, 1]} : vector<2x64xf32> to vector<2x32xf32>
    %280 = vector.extract_strided_slice %269 {offsets = [0, 64], sizes = [2, 32], strides = [1, 1]} : vector<2x96xf32> to vector<2x32xf32>
    %281 = vector.extract_strided_slice %241 {offsets = [0, 64], sizes = [2, 32], strides = [1, 1]} : vector<2x96xf32> to vector<2x32xf32>
    %282 = arith.mulf %278, %281 : vector<2x32xf32>
    %283 = arith.addf %280, %282 : vector<2x32xf32>
    %284 = math.tanh %283 : vector<2x32xf32>
    %cst_74 = arith.constant 1.000000e+00 : f32
    %285 = vector.broadcast %cst_74 : f32 to vector<2x32xf32>
    %286 = arith.subf %285, %279 : vector<2x32xf32>
    %287 = arith.mulf %286, %284 : vector<2x32xf32>
    %288 = arith.mulf %279, %238 : vector<2x32xf32>
    %289 = arith.addf %287, %288 : vector<2x32xf32>
    %cst_75 = arith.constant dense<0.000000e+00> : vector<2x128xf32>
    %290 = tpu.matmul %289, %1, %cst_75 {dimension_numbers = #tpu.dot_dimension_numbers<[1], [0], [0], [1], [0, 0, 1, 1], [], []>} : vector<2x32xf32>, vector<32x128xf32>, vector<2x128xf32> -> vector<2x128xf32>
    %291 = arith.addf %290, %4 : vector<2x128xf32>
    %292 = vector.extract_strided_slice %291 {offsets = [0, 0], sizes = [2, 96], strides = [1, 1]} : vector<2x128xf32> to vector<2x96xf32>
    %293 = vector.extract_strided_slice %291 {offsets = [0, 96], sizes = [2, 16], strides = [1, 1]} : vector<2x128xf32> to vector<2x16xf32>
    %cst_76 = arith.constant dense<0xFF800000> : vector<2xf32>
    %294 = vector.multi_reduction <maximumf>, %293, %cst_76 [1] : vector<2x16xf32> to vector<2xf32>
    %295 = vector.shape_cast %294 : vector<2xf32> to vector<2x1xf32>
    %296 = vector.broadcast %295 : vector<2x1xf32> to vector<2x16xf32>
    %297 = arith.cmpf oeq, %293, %296 : vector<2x16xf32>
    %c16_i32_77 = arith.constant 16 : i32
    %298 = vector.broadcast %c16_i32_77 : i32 to vector<2x16xi32>
    %299 = arith.select %297, %5, %298 : vector<2x16xi1>, vector<2x16xi32>
    %cst_78 = arith.constant dense<2147483647> : vector<2xi32>
    %300 = vector.multi_reduction <minsi>, %299, %cst_78 [1] : vector<2x16xi32> to vector<2xi32>
    %301 = vector.shape_cast %300 : vector<2xi32> to vector<2x1xi32>
    %c5 = arith.constant 5 : index
    %c0_79 = arith.constant 0 : index
    %c0_80 = arith.constant 0 : index
    %302 = vector.load %arg5[%c5, %c0_79, %c0_80] : memref<8x2x1xi32, #tpu.memory_space<vmem>>, vector<1x2x1xi32>
    %303 = vector.shape_cast %302 : vector<1x2x1xi32> to vector<2x1xi32>
    %304 = vector.shape_cast %301 : vector<2x1xi32> to vector<1x2x1xi32>
    tpu.vector_store %arg5[%c5, %c0_79, %c0_80], %304 {strides = array<i32>} : memref<8x2x1xi32, #tpu.memory_space<vmem>>, vector<1x2x1xi32>,
    %305 = vector.broadcast %301 : vector<2x1xi32> to vector<2x16xi32>
    %306 = arith.cmpi eq, %5, %305 : vector<2x16xi32>
    %307 = arith.extui %306 : vector<2x16xi1> to vector<2x16xi32>
    %308 = arith.sitofp %307 : vector<2x16xi32> to vector<2x16xf32>
    %309 = vector.broadcast %295 : vector<2x1xf32> to vector<2x16xf32>
    %310 = arith.subf %293, %309 : vector<2x16xf32>
    %311 = math.exp %310 : vector<2x16xf32>
    %cst_81 = arith.constant dense<0.000000e+00> : vector<2xf32>
    %312 = vector.multi_reduction <add>, %311, %cst_81 [1] : vector<2x16xf32> to vector<2xf32>
    %313 = vector.shape_cast %312 : vector<2xf32> to vector<2x1xf32>
    %314 = math.log %313 : vector<2x1xf32>
    %315 = vector.broadcast %314 : vector<2x1xf32> to vector<2x16xf32>
    %316 = arith.subf %310, %315 : vector<2x16xf32>
    %c5_82 = arith.constant 5 : index
    %c0_83 = arith.constant 0 : index
    %c0_84 = arith.constant 0 : index
    %317 = vector.load %arg4[%c5_82, %c0_83, %c0_84] : memref<8x2x16xf32, #tpu.memory_space<vmem>>, vector<1x2x16xf32>
    %318 = vector.shape_cast %317 : vector<1x2x16xf32> to vector<2x16xf32>
    %319 = vector.shape_cast %316 : vector<2x16xf32> to vector<1x2x16xf32>
    tpu.vector_store %arg4[%c5_82, %c0_83, %c0_84], %319 {strides = array<i32>} : memref<8x2x16xf32, #tpu.memory_space<vmem>>, vector<1x2x16xf32>,
    %cst_85 = arith.constant dense<0.000000e+00> : vector<2x96xf32>
    %320 = tpu.matmul %308, %0, %cst_85 {dimension_numbers = #tpu.dot_dimension_numbers<[1], [0], [0], [1], [0, 0, 1, 1], [], []>} : vector<2x16xf32>, vector<16x96xf32>, vector<2x96xf32> -> vector<2x96xf32>
    %321 = vector.extract_strided_slice %320 {offsets = [0, 0], sizes = [2, 64], strides = [1, 1]} : vector<2x96xf32> to vector<2x64xf32>
    %322 = vector.extract_strided_slice %292 {offsets = [0, 0], sizes = [2, 64], strides = [1, 1]} : vector<2x96xf32> to vector<2x64xf32>
    %323 = arith.addf %321, %322 : vector<2x64xf32>
    %324 = arith.negf %323 : vector<2x64xf32>
    %325 = math.exp %324 : vector<2x64xf32>
    %cst_86 = arith.constant 1.000000e+00 : f32
    %326 = vector.broadcast %cst_86 : f32 to vector<2x64xf32>
    %327 = arith.addf %326, %325 : vector<2x64xf32>
    %328 = arith.divf %326, %327 : vector<2x64xf32>
    %329 = vector.extract_strided_slice %328 {offsets = [0, 0], sizes = [2, 32], strides = [1, 1]} : vector<2x64xf32> to vector<2x32xf32>
    %330 = vector.extract_strided_slice %328 {offsets = [0, 32], sizes = [2, 32], strides = [1, 1]} : vector<2x64xf32> to vector<2x32xf32>
    %331 = vector.extract_strided_slice %320 {offsets = [0, 64], sizes = [2, 32], strides = [1, 1]} : vector<2x96xf32> to vector<2x32xf32>
    %332 = vector.extract_strided_slice %292 {offsets = [0, 64], sizes = [2, 32], strides = [1, 1]} : vector<2x96xf32> to vector<2x32xf32>
    %333 = arith.mulf %329, %332 : vector<2x32xf32>
    %334 = arith.addf %331, %333 : vector<2x32xf32>
    %335 = math.tanh %334 : vector<2x32xf32>
    %cst_87 = arith.constant 1.000000e+00 : f32
    %336 = vector.broadcast %cst_87 : f32 to vector<2x32xf32>
    %337 = arith.subf %336, %330 : vector<2x32xf32>
    %338 = arith.mulf %337, %335 : vector<2x32xf32>
    %339 = arith.mulf %330, %289 : vector<2x32xf32>
    %340 = arith.addf %338, %339 : vector<2x32xf32>
    %cst_88 = arith.constant dense<0.000000e+00> : vector<2x128xf32>
    %341 = tpu.matmul %340, %1, %cst_88 {dimension_numbers = #tpu.dot_dimension_numbers<[1], [0], [0], [1], [0, 0, 1, 1], [], []>} : vector<2x32xf32>, vector<32x128xf32>, vector<2x128xf32> -> vector<2x128xf32>
    %342 = arith.addf %341, %4 : vector<2x128xf32>
    %343 = vector.extract_strided_slice %342 {offsets = [0, 0], sizes = [2, 96], strides = [1, 1]} : vector<2x128xf32> to vector<2x96xf32>
    %344 = vector.extract_strided_slice %342 {offsets = [0, 96], sizes = [2, 16], strides = [1, 1]} : vector<2x128xf32> to vector<2x16xf32>
    %cst_89 = arith.constant dense<0xFF800000> : vector<2xf32>
    %345 = vector.multi_reduction <maximumf>, %344, %cst_89 [1] : vector<2x16xf32> to vector<2xf32>
    %346 = vector.shape_cast %345 : vector<2xf32> to vector<2x1xf32>
    %347 = vector.broadcast %346 : vector<2x1xf32> to vector<2x16xf32>
    %348 = arith.cmpf oeq, %344, %347 : vector<2x16xf32>
    %c16_i32_90 = arith.constant 16 : i32
    %349 = vector.broadcast %c16_i32_90 : i32 to vector<2x16xi32>
    %350 = arith.select %348, %5, %349 : vector<2x16xi1>, vector<2x16xi32>
    %cst_91 = arith.constant dense<2147483647> : vector<2xi32>
    %351 = vector.multi_reduction <minsi>, %350, %cst_91 [1] : vector<2x16xi32> to vector<2xi32>
    %352 = vector.shape_cast %351 : vector<2xi32> to vector<2x1xi32>
    %c6 = arith.constant 6 : index
    %c0_92 = arith.constant 0 : index
    %c0_93 = arith.constant 0 : index
    %353 = vector.load %arg5[%c6, %c0_92, %c0_93] : memref<8x2x1xi32, #tpu.memory_space<vmem>>, vector<1x2x1xi32>
    %354 = vector.shape_cast %353 : vector<1x2x1xi32> to vector<2x1xi32>
    %355 = vector.shape_cast %352 : vector<2x1xi32> to vector<1x2x1xi32>
    tpu.vector_store %arg5[%c6, %c0_92, %c0_93], %355 {strides = array<i32>} : memref<8x2x1xi32, #tpu.memory_space<vmem>>, vector<1x2x1xi32>,
    %356 = vector.broadcast %352 : vector<2x1xi32> to vector<2x16xi32>
    %357 = arith.cmpi eq, %5, %356 : vector<2x16xi32>
    %358 = arith.extui %357 : vector<2x16xi1> to vector<2x16xi32>
    %359 = arith.sitofp %358 : vector<2x16xi32> to vector<2x16xf32>
    %360 = vector.broadcast %346 : vector<2x1xf32> to vector<2x16xf32>
    %361 = arith.subf %344, %360 : vector<2x16xf32>
    %362 = math.exp %361 : vector<2x16xf32>
    %cst_94 = arith.constant dense<0.000000e+00> : vector<2xf32>
    %363 = vector.multi_reduction <add>, %362, %cst_94 [1] : vector<2x16xf32> to vector<2xf32>
    %364 = vector.shape_cast %363 : vector<2xf32> to vector<2x1xf32>
    %365 = math.log %364 : vector<2x1xf32>
    %366 = vector.broadcast %365 : vector<2x1xf32> to vector<2x16xf32>
    %367 = arith.subf %361, %366 : vector<2x16xf32>
    %c6_95 = arith.constant 6 : index
    %c0_96 = arith.constant 0 : index
    %c0_97 = arith.constant 0 : index
    %368 = vector.load %arg4[%c6_95, %c0_96, %c0_97] : memref<8x2x16xf32, #tpu.memory_space<vmem>>, vector<1x2x16xf32>
    %369 = vector.shape_cast %368 : vector<1x2x16xf32> to vector<2x16xf32>
    %370 = vector.shape_cast %367 : vector<2x16xf32> to vector<1x2x16xf32>
    tpu.vector_store %arg4[%c6_95, %c0_96, %c0_97], %370 {strides = array<i32>} : memref<8x2x16xf32, #tpu.memory_space<vmem>>, vector<1x2x16xf32>,
    %cst_98 = arith.constant dense<0.000000e+00> : vector<2x96xf32>
    %371 = tpu.matmul %359, %0, %cst_98 {dimension_numbers = #tpu.dot_dimension_numbers<[1], [0], [0], [1], [0, 0, 1, 1], [], []>} : vector<2x16xf32>, vector<16x96xf32>, vector<2x96xf32> -> vector<2x96xf32>
    %372 = vector.extract_strided_slice %371 {offsets = [0, 0], sizes = [2, 64], strides = [1, 1]} : vector<2x96xf32> to vector<2x64xf32>
    %373 = vector.extract_strided_slice %343 {offsets = [0, 0], sizes = [2, 64], strides = [1, 1]} : vector<2x96xf32> to vector<2x64xf32>
    %374 = arith.addf %372, %373 : vector<2x64xf32>
    %375 = arith.negf %374 : vector<2x64xf32>
    %376 = math.exp %375 : vector<2x64xf32>
    %cst_99 = arith.constant 1.000000e+00 : f32
    %377 = vector.broadcast %cst_99 : f32 to vector<2x64xf32>
    %378 = arith.addf %377, %376 : vector<2x64xf32>
    %379 = arith.divf %377, %378 : vector<2x64xf32>
    %380 = vector.extract_strided_slice %379 {offsets = [0, 0], sizes = [2, 32], strides = [1, 1]} : vector<2x64xf32> to vector<2x32xf32>
    %381 = vector.extract_strided_slice %379 {offsets = [0, 32], sizes = [2, 32], strides = [1, 1]} : vector<2x64xf32> to vector<2x32xf32>
    %382 = vector.extract_strided_slice %371 {offsets = [0, 64], sizes = [2, 32], strides = [1, 1]} : vector<2x96xf32> to vector<2x32xf32>
    %383 = vector.extract_strided_slice %343 {offsets = [0, 64], sizes = [2, 32], strides = [1, 1]} : vector<2x96xf32> to vector<2x32xf32>
    %384 = arith.mulf %380, %383 : vector<2x32xf32>
    %385 = arith.addf %382, %384 : vector<2x32xf32>
    %386 = math.tanh %385 : vector<2x32xf32>
    %cst_100 = arith.constant 1.000000e+00 : f32
    %387 = vector.broadcast %cst_100 : f32 to vector<2x32xf32>
    %388 = arith.subf %387, %381 : vector<2x32xf32>
    %389 = arith.mulf %388, %386 : vector<2x32xf32>
    %390 = arith.mulf %381, %340 : vector<2x32xf32>
    %391 = arith.addf %389, %390 : vector<2x32xf32>
    %cst_101 = arith.constant dense<0.000000e+00> : vector<2x128xf32>
    %392 = tpu.matmul %391, %1, %cst_101 {dimension_numbers = #tpu.dot_dimension_numbers<[1], [0], [0], [1], [0, 0, 1, 1], [], []>} : vector<2x32xf32>, vector<32x128xf32>, vector<2x128xf32> -> vector<2x128xf32>
    %393 = arith.addf %392, %4 : vector<2x128xf32>
    %394 = vector.extract_strided_slice %393 {offsets = [0, 96], sizes = [2, 16], strides = [1, 1]} : vector<2x128xf32> to vector<2x16xf32>
    %cst_102 = arith.constant dense<0xFF800000> : vector<2xf32>
    %395 = vector.multi_reduction <maximumf>, %394, %cst_102 [1] : vector<2x16xf32> to vector<2xf32>
    %396 = vector.shape_cast %395 : vector<2xf32> to vector<2x1xf32>
    %397 = vector.broadcast %396 : vector<2x1xf32> to vector<2x16xf32>
    %398 = arith.cmpf oeq, %394, %397 : vector<2x16xf32>
    %c16_i32_103 = arith.constant 16 : i32
    %399 = vector.broadcast %c16_i32_103 : i32 to vector<2x16xi32>
    %400 = arith.select %398, %5, %399 : vector<2x16xi1>, vector<2x16xi32>
    %cst_104 = arith.constant dense<2147483647> : vector<2xi32>
    %401 = vector.multi_reduction <minsi>, %400, %cst_104 [1] : vector<2x16xi32> to vector<2xi32>
    %402 = vector.shape_cast %401 : vector<2xi32> to vector<2x1xi32>
    %c7 = arith.constant 7 : index
    %c0_105 = arith.constant 0 : index
    %c0_106 = arith.constant 0 : index
    %403 = vector.load %arg5[%c7, %c0_105, %c0_106] : memref<8x2x1xi32, #tpu.memory_space<vmem>>, vector<1x2x1xi32>
    %404 = vector.shape_cast %403 : vector<1x2x1xi32> to vector<2x1xi32>
    %405 = vector.shape_cast %402 : vector<2x1xi32> to vector<1x2x1xi32>
    tpu.vector_store %arg5[%c7, %c0_105, %c0_106], %405 {strides = array<i32>} : memref<8x2x1xi32, #tpu.memory_space<vmem>>, vector<1x2x1xi32>,
    %406 = vector.broadcast %396 : vector<2x1xf32> to vector<2x16xf32>
    %407 = arith.subf %394, %406 : vector<2x16xf32>
    %408 = math.exp %407 : vector<2x16xf32>
    %cst_107 = arith.constant dense<0.000000e+00> : vector<2xf32>
    %409 = vector.multi_reduction <add>, %408, %cst_107 [1] : vector<2x16xf32> to vector<2xf32>
    %410 = vector.shape_cast %409 : vector<2xf32> to vector<2x1xf32>
    %411 = math.log %410 : vector<2x1xf32>
    %412 = vector.broadcast %411 : vector<2x1xf32> to vector<2x16xf32>
    %413 = arith.subf %407, %412 : vector<2x16xf32>
    %c7_108 = arith.constant 7 : index
    %c0_109 = arith.constant 0 : index
    %c0_110 = arith.constant 0 : index
    %414 = vector.load %arg4[%c7_108, %c0_109, %c0_110] : memref<8x2x16xf32, #tpu.memory_space<vmem>>, vector<1x2x16xf32>
    %415 = vector.shape_cast %414 : vector<1x2x16xf32> to vector<2x16xf32>
    %416 = vector.shape_cast %413 : vector<2x16xf32> to vector<1x2x16xf32>
    tpu.vector_store %arg4[%c7_108, %c0_109, %c0_110], %416 {strides = array<i32>} : memref<8x2x16xf32, #tpu.memory_space<vmem>>, vector<1x2x16xf32>,
    %c0_111 = arith.constant 0 : index
    %c0_112 = arith.constant 0 : index
    %417 = vector.load %arg6[%c0_111, %c0_112] : memref<2x32xf32, #tpu.memory_space<vmem>>, vector<2x32xf32>
    tpu.vector_store %arg6[%c0_111, %c0_112], %391 {strides = array<i32>} : memref<2x32xf32, #tpu.memory_space<vmem>>, vector<2x32xf32>,
    return
  }
}

</mosaic_0001>

<bundles_post_ra>
// kernel: tpu_custom_call.1
= control target key start
LH: loop header
LB: loop body
LE: loop exit
PB: predicated region body
PF: predicated region fallthrough
CT: control target
= control target key end

     0   :  { %12 = vsyncpa [#allocation3], 0  ;;  %s2891_s0 = inlined_call_operand.hbm [shape: f32[16,96], index: 0, kind: input, shape index: {}]   ;;  %s2892_s1 = inlined_call_operand.hbm [shape: f32[32,128], index: 1, kind: input, shape index: {}]   ;;  %s2893_s2 = inlined_call_operand.vmem [shape: f32[1,128], index: 2, kind: input, shape index: {}]   ;;  %s2894_s3 = inlined_call_operand.vmem [shape: f32[2,32], index: 3, kind: input, shape index: {}]   ;;  %s2895_s4 = inlined_call_operand.hbm [shape: f32[8,2,16], index: 4, kind: output, shape index: {0}]   ;;  %s2896_s5 = inlined_call_operand.vmem [shape: s32[8,2,1], index: 5, kind: output, shape index: {1}]   ;;  %s2897_s6 = inlined_call_operand.hbm [shape: f32[2,32], index: 6, kind: output, shape index: {2}]  }
   0x1   :  { %13 = vsyncpa [#allocation6], 0 }
   0x2   :  { %14 = vsyncpa [#allocation4], 0 }
   0x3   :  { %15 = vsyncpa [#allocation9], 0  ;;  %s2376_s21 = smov [#allocation2]  }
   0x4   :  { %s21_s22 = sshll.u32 %s2376_s21, 4  ;;  %s22_s22 = int_to_ptr.vmem [resolvable:$true] %s21_s22 }
   0x5   :  { %s2296_s23 = scalar_lea.vmem %s22_s22, 256  ;;  %p2301_p1 = scmp.lt.s32.totalorder %s22_s22, %s22_s22 }
   0x6   :  { %p2297_p0 = scmp.ne.s32.totalorder %s22_s22, %s2296_s23  ;;  %p2302_p2 = scmp.lt.s32.totalorder %s2296_s23, %s2296_s23 }
   0x8   :  { %p2303_p3 = por %p2302_p2, %p2301_p1 }
   0xa   :  { %p2304_p4 = pnand %p2303_p3, %p2297_p0 }
   0xc   :  { %2307 = shalt.err (!%p2304_p4)
}
   0xd   :  { %s2377_s24 = smov 128   ;;  %s2378_s25 = smov 8  }
   0xe   :  { %27 = dma.hbm_to_vmem [thread:$0]  %s2891_s0, 256, %s22_s22, [#allocation3], %s2377_s24, %s2377_s24, %s2378_s25  }
   0xf   :  { %s2379_s28 = smov [#allocation5]  }
  0x10   :  { %s33_s29 = sshll.u32 %s2379_s28, 4  ;;  %s34_s29 = int_to_ptr.vmem [resolvable:$true] %s33_s29 }
  0x11   :  { %s2316_s30 = scalar_lea.vmem %s34_s29, 512  ;;  %p2321_p6 = scmp.lt.s32.totalorder %s34_s29, %s34_s29 }
  0x12   :  { %p2317_p5 = scmp.ne.s32.totalorder %s34_s29, %s2316_s30  ;;  %p2322_p7 = scmp.lt.s32.totalorder %s2316_s30, %s2316_s30 }
  0x14   :  { %p2323_p8 = por %p2322_p7, %p2321_p6 }
  0x16   :  { %p2324_p9 = pnand %p2323_p8, %p2317_p5 }
  0x18   :  { %2327 = shalt.err (!%p2324_p9)
}
  0x19   :  { %39 = dma.hbm_to_vmem [thread:$0]  %s2892_s1, 512, %s34_s29, [#allocation6], %s2377_s24, %s2377_s24, %s2378_s25  }
  0x1a   :  { %2368 = dma.done.wait [#allocation3], 256  }
  0x1b   :  { %2369 = vsyncadd [#allocation3], 4294967040 }
  0x1c   :  { %2370 = dma.done.wait [#allocation6], 512  }
  0x1d   :  { %2371 = vsyncadd [#allocation6], 4294966784  ;;  %v63_v0 = vlaneseq  ;;  %v2380_v1 = vmov 0.0   ;;  %vm2381_vm0 = vmmov 0   ;;  %v2438_v3 = vld [vmem:[#allocation5 + $0x18] sm:$0xff]  ;;  %v2440_v4 = vld [vmem:[#allocation5 + $0x10] sm:$0xff] }
  0x1e   :  { %2040 = vmatprep.subr.mxu0 %v2380_v1  ;;  %2051 = vmatprep.subr.mxu1 %v2380_v1  ;;  %v2443_v5 = vld [vmem:[#allocation2 + $0x8] sm:$0xff]  ;;  %v2446_v6 = vld [vmem:[#allocation5 + $0x8] sm:$0xff]  ;;  %v2449_v7 = vld [vmem:[#allocation2] sm:$0xff]  ;;  %vm143_vm2 = vcmask 130048   ;;  %vm66_vm3 = vcmask 261120   ;;  %s2382_s10 = smov 64  }
  0x1f   :  { %2048 = vmatprep.mubr.msk.f32.mxu0 %vm2381_vm0, %v2380_v1  ;;  %2055 = vmatprep.mubr.msk.f32.mxu1 %vm2381_vm0, %v2380_v1  ;;  %v2435_v2 = vand.u32 127, %v63_v0  ;;  %v2455_v9 = vld [vmem:[#allocation5] sm:$0xff]  ;;  %v65_v10 = vld [vmem:[%s2894_s3] sm:$0x3]  ;;  %s2383_s11 = smov 96   ;;  %s2384_s12 = smov 32  }
  0x20   :  { %2041 = vmatpush3.msra.mxu0 %v2438_v3  ;;  %2052 = vmatpush3.msra.mxu1 %v2443_v5  ;;  %v2491_v12 = vld [vmem:[%s2893_s2] ss:$0 sm:$0xff]  ;;  %vm321_vm4 = vcmask 911104   ;;  %vm344_vm7 = vcmask 1024  }
  0x21   :  { %vm140_vm1 = vcmp.eq.s32.totalorder %v2435_v2, 1  ;;  %2042 = vmatprep.subr.mxu0 %v2380_v1  ;;  %2053 = vmatprep.subr.mxu1 %v2380_v1 }
  0x22   :  { %v1932_v8 = vsel %vm140_vm1, 1.0, %v2380_v1  ;;  %2043 = vmatpush3.msra.mxu0 %v2440_v4  ;;  %2054 = vmatpush3.msra.mxu1 %v2449_v7 }
  0x23   :  { %2044 = vmatprep.subr.mxu0 %v2380_v1  ;;  %2056 = vmatmul.mubr.msk.f32.vlgmr.msra.gmra.mxu1 %vm143_vm2, %v1932_v8 }
  0x24   :  { %2045 = vmatpush3.msra.mxu0 %v2446_v6  ;;  %2058 = vmatprep.subr.mxu1 %v2380_v1 }
  0x25   :  { %2046 = vmatprep.subr.mxu0 %v2380_v1  ;;  %2059 = vmatpush3.msra.mxu1 %v2438_v3 }
  0x26   :  { %2047 = vmatpush3.msra.mxu0 %v2455_v9  ;;  %2060 = vmatprep.subr.mxu1 %v2380_v1 }
  0x27   :  { %2049 = vmatmul.mubr.msk.f32.vlgmr.msra.gmra.mxu0 %vm66_vm3, %v65_v10  ;;  %2061 = vmatpush3.msra.mxu1 %v2440_v4 }
  0x28   :  { %2066 = vmatprep.mubr.msk.f32.mxu1 %vm2381_vm0, %v2380_v1  ;;  %2062 = vmatprep.subr.mxu1 %v2380_v1 }
  0x29   :  { %2076 = vmatprep.subr.mxu0 %v2380_v1  ;;  %2063 = vmatpush3.msra.mxu1 %v2446_v6 }
  0x2a   :  { %2077 = vmatpush3.msra.mxu0 %v2438_v3  ;;  %2064 = vmatprep.subr.mxu1 %v2380_v1 }
  0x2b   :  { %2078 = vmatprep.subr.mxu0 %v2380_v1  ;;  %2065 = vmatpush3.msra.mxu1 %v2455_v9 }
  0x2c   :  { %2079 = vmatpush3.msra.mxu0 %v2440_v4  ;;  %2069 = vmatprep.subr.mxu1 %v2380_v1 }
  0x2d   :  { %2080 = vmatprep.subr.mxu0 %v2380_v1  ;;  %2084 = vmatprep.mubr.msk.f32.mxu0 %vm2381_vm0, %v2380_v1 }
  0x2e   :  { %2081 = vmatpush3.msra.mxu0 %v2446_v6 }
  0x2f   :  { %2082 = vmatprep.subr.mxu0 %v2380_v1 }
  0x30   :  { %2083 = vmatpush3.msra.mxu0 %v2455_v9 }
  0x31   :  { %2105 = vmatprep.subr.mxu0 %v2380_v1 }
  0xe3   :  { %v213_v11 = vpop.f32.mrf.mxu1 }
  0xe5   :  { %v2057_v13 = vpop.f32.mrf.mxu1 }
  0xe7   :  { %v136_v14 = vpop.f32.mrf.mxu0 }
  0xe8   :  { %v137_v15 = vadd.f32 %v2491_v12, %v136_v14 }
  0xe9   :  { %v2050_v16 = vpop.f32.mrf.mxu0 }
  0xea   :  { %225 = vrot.lane.b32.xlu0 %v137_v15, %s2382_s10  ;;  %v217_v17 = vadd.f32 %v213_v11, %v137_v15 }
  0xec   :  { %v1934_v18 = vmul.f32 -1.442695, %v217_v17 }
  0xee   :  { %2207 = vpow2.f32 %v1934_v18 }
  0xfb   :  { %v2208_v19 = vpop.eup %2207 }
  0xfc   :  { %v221_v20 = vadd.f32 1.0, %v2208_v19 }
  0xfe   :  { %2209 = vrcp.f32 %v221_v20 }
 0x10b   :  { %v2210_v21 = vpop.eup %2209 }
 0x10c   :  { %v235_v28 = vsub.f32 1.0, %v2210_v21 }
 0x15c   :  { %v226_v22 = vpop.permute.xlu0 %225 }
 0x15d   :  { %v228_v23 = vmul.f32 %v2210_v21, %v226_v22 }
 0x15f   :  { %230 = vrot.lane.b32.xlu0 %v228_v23, %s2382_s10 }
 0x1d1   :  { %v231_v24 = vpop.permute.xlu0 %230 }
 0x1d2   :  { %v233_v25 = vadd.f32 %v231_v24, %v213_v11 }
 0x1d4   :  { %2211 = vtanh.f32 %v233_v25 }
 0x1e1   :  { %v2212_v26 = vpop.eup %2211 }
 0x1e2   :  { %237 = vrot.lane.b32.xlu1 %v2212_v26, %s2383_s11 }
 0x1e6   :  { %241 = vrot.lane.b32.xlu1 %v65_v10, %s2384_s12 }
 0x254   :  { %v238_v27 = vpop.permute.xlu1 %237 }
 0x255   :  { %v240_v30 = vmul.f32 %v238_v27, %v235_v28 }
 0x258   :  { %v242_v29 = vpop.permute.xlu1 %241 }
 0x259   :  { %v244_v31 = vmul.f32 %v2210_v21, %v242_v29 }
 0x25b   :  { %v2498_v32 = vadd.f32 %v244_v31, %v240_v30 }
 0x25d   :  { %247 = vrot.lane.b32.xlu0 %v2498_v32, %s2383_s11 }
 0x261   :  { %326 = vrot.lane.b32.xlu0 %v2435_v2, %s2383_s11 }
 0x2cf   :  { %v248_v33 = vpop.permute.xlu0 %247 }
 0x2d0   :  { %2067 = vmatmul.mubr.msk.f32.vlgmr.msra.gmra.mxu1 %vm66_vm3, %v248_v33 }
 0x2d1   :  { %2070 = vmatpush3.msra.mxu1 %v2443_v5  ;;  %2073 = vmatprep.mubr.msk.f32.mxu1 %vm2381_vm0, %v2380_v1 }
 0x2d2   :  { %2071 = vmatprep.subr.mxu1 %v2380_v1 }
 0x2d3   :  { %2072 = vmatpush3.msra.mxu1 %v2449_v7  ;;  %v2516_v38 = vpop.permute.xlu0 %326 }
 0x2d4   :  { %2087 = vmatprep.subr.mxu1 %v2380_v1 }
 0x390   :  { %v317_v34 = vpop.f32.mrf.mxu1 }
 0x391   :  { %v2512_v35 = vadd.f32 %v2491_v12, %v317_v34 }
 0x392   :  { %v2068_v36 = vpop.f32.mrf.mxu1 }
 0x393   :  { %v322_v37 = vsel %vm321_vm4, %v2512_v35, -inf }
 0x394   :  { %323 = vmax.xlane.f32.xlu1 %v322_v37 }
 0x41d   :  { %v2518_v39 = vpop.xlane.xlu1 %323 }
 0x41e   :  { %vm325_vm5 = vcmp.eq.f32.partialorder %v2512_v35, %v2518_v39 }
 0x41f   :  { %v328_v40 = vsel %vm325_vm5, %v2516_v38, 16 }
 0x420   :  { %v329_v41 = vsel %vm321_vm4, %v328_v40, 2147483647 }
 0x421   :  { %v331_v42 = vshra.s32 %v329_v41, 16  ;;  %v330_v44 = vand.u32 65535, %v329_v41 }
 0x423   :  { %v333_v43 = vcvt.s32.f32 %v331_v42  ;;  %v332_v46 = vcvt.s32.f32 %v330_v44 }
 0x425   :  { %334 = vmin.xlane.f32.xlu0 %v333_v43 }
 0x43b   :  { %449 = vrot.lane.b32.xlu0 %v2512_v35, %s2382_s10 }
 0x4ae   :  { %v335_v45 = vpop.xlane.xlu0 %334 }
 0x4af   :  { %vm336_vm6 = vcmp.eq.f32.partialorder %v333_v43, %v335_v45  ;;  %v341_v48 = vcvt.f32.s32 %v335_v45 }
 0x4b0   :  { %v337_v47 = vsel %vm336_vm6, %v332_v46, inf }
 0x4b1   :  { %338 = vmin.xlane.f32.xlu1 %v337_v47  ;;  %v342_v50 = vshll.u32 %v341_v48, 16 }
 0x4b2   :  { %v450_v61 = vpop.permute.xlu0 %449 }
 0x53a   :  { %v339_v49 = vpop.xlane.xlu1 %338 }
 0x53b   :  { %v340_v51 = vcvt.f32.s32 %v339_v49 }
 0x53d   :  { %v343_v52 = vadd.s32 %v342_v50, %v340_v51 }
 0x53f   :  { %345 = vst.msk [vmem:[%s2896_s5] sm:$0x3] %vm344_vm7, %v343_v52  ;;  %vm346_vm8 = vcmp.eq.s32.totalorder %v2435_v2, %v343_v52 }
 0x540   :  { %v1936_v53 = vsel %vm346_vm8, 1.0, %v2380_v1 }
 0x541   :  { %2074 = vmatmul.mubr.msk.f32.vlgmr.msra.gmra.mxu1 %vm143_vm2, %v1936_v53 }
 0x542   :  { %2088 = vmatpush3.msra.mxu1 %v2443_v5  ;;  %2091 = vmatprep.mubr.msk.f32.mxu1 %vm2381_vm0, %v2380_v1 }
 0x543   :  { %2089 = vmatprep.subr.mxu1 %v2380_v1 }
 0x544   :  { %2090 = vmatpush3.msra.mxu1 %v2449_v7 }
 0x545   :  { %2094 = vmatprep.subr.mxu1 %v2380_v1 }
 0x601   :  { %v437_v54 = vpop.f32.mrf.mxu1 }
 0x602   :  { %v441_v55 = vadd.f32 %v437_v54, %v2512_v35 }
 0x603   :  { %v2075_v56 = vpop.f32.mrf.mxu1 }
 0x604   :  { %v1938_v57 = vmul.f32 -1.442695, %v441_v55 }
 0x606   :  { %2213 = vpow2.f32 %v1938_v57 }
 0x613   :  { %v2214_v58 = vpop.eup %2213 }
 0x614   :  { %v445_v59 = vadd.f32 1.0, %v2214_v58 }
 0x616   :  { %2215 = vrcp.f32 %v445_v59 }
 0x623   :  { %v2216_v60 = vpop.eup %2215 }
 0x624   :  { %v452_v62 = vmul.f32 %v2216_v60, %v450_v61  ;;  %v459_v10 = vsub.f32 1.0, %v2216_v60  ;;  %v465_v13 = vmul.f32 %v2216_v60, %v2498_v32 }
 0x626   :  { %454 = vrot.lane.b32.xlu1 %v452_v62, %s2382_s10 }
 0x698   :  { %v455_v63 = vpop.permute.xlu1 %454 }
 0x699   :  { %v457_v0 = vadd.f32 %v455_v63, %v437_v54 }
 0x69b   :  { %2217 = vtanh.f32 %v457_v0 }
 0x6a8   :  { %v2218_v8 = vpop.eup %2217 }
 0x6a9   :  { %461 = vrot.lane.b32.xlu1 %v2218_v8, %s2383_s11 }
 0x71b   :  { %v462_v11 = vpop.permute.xlu1 %461 }
 0x71c   :  { %v464_v14 = vmul.f32 %v462_v11, %v459_v10 }
 0x71e   :  { %v2543_v15 = vadd.f32 %v465_v13, %v464_v14 }
 0x720   :  { %468 = vrot.lane.b32.xlu0 %v2543_v15, %s2383_s11 }
 0x792   :  { %v469_v16 = vpop.permute.xlu0 %468 }
 0x793   :  { %2085 = vmatmul.mubr.msk.f32.vlgmr.msra.gmra.mxu0 %vm66_vm3, %v469_v16 }
 0x794   :  { %2106 = vmatpush3.msra.mxu0 %v2443_v5  ;;  %2109 = vmatprep.mubr.msk.f32.mxu0 %vm2381_vm0, %v2380_v1 }
 0x795   :  { %2107 = vmatprep.subr.mxu0 %v2380_v1 }
 0x796   :  { %2108 = vmatpush3.msra.mxu0 %v2449_v7 }
 0x797   :  { %2112 = vmatprep.subr.mxu0 %v2380_v1 }
 0x853   :  { %v538_v17 = vpop.f32.mrf.mxu0 }
 0x854   :  { %v2555_v18 = vadd.f32 %v2491_v12, %v538_v17 }
 0x855   :  { %v2086_v19 = vpop.f32.mrf.mxu0 }
 0x856   :  { %v542_v20 = vsel %vm321_vm4, %v2555_v18, -inf }
 0x857   :  { %543 = vmax.xlane.f32.xlu1 %v542_v20 }
 0x868   :  { %667 = vrot.lane.b32.xlu1 %v2555_v18, %s2382_s10 }
 0x8e0   :  { %v2561_v21 = vpop.xlane.xlu1 %543 }
 0x8e1   :  { %vm545_vm9 = vcmp.eq.f32.partialorder %v2555_v18, %v2561_v21 }
 0x8e2   :  { %v546_v22 = vsel %vm545_vm9, %v2516_v38, 16 }
 0x8e3   :  { %v547_v23 = vsel %vm321_vm4, %v546_v22, 2147483647 }
 0x8e4   :  { %v549_v24 = vshra.s32 %v547_v23, 16  ;;  %v548_v26 = vand.u32 65535, %v547_v23  ;;  %v668_v46 = vpop.permute.xlu1 %667 }
 0x8e6   :  { %v551_v25 = vcvt.s32.f32 %v549_v24  ;;  %v550_v28 = vcvt.s32.f32 %v548_v26 }
 0x8e8   :  { %552 = vmin.xlane.f32.xlu0 %v551_v25 }
 0x971   :  { %v553_v27 = vpop.xlane.xlu0 %552 }
 0x972   :  { %vm554_vm10 = vcmp.eq.f32.partialorder %v551_v25, %v553_v27  ;;  %v559_v30 = vcvt.f32.s32 %v553_v27 }
 0x973   :  { %v555_v29 = vsel %vm554_vm10, %v550_v28, inf }
 0x974   :  { %556 = vmin.xlane.f32.xlu0 %v555_v29  ;;  %v560_v32 = vshll.u32 %v559_v30, 16 }
 0x9fd   :  { %v557_v31 = vpop.xlane.xlu0 %556 }
 0x9fe   :  { %v558_v33 = vcvt.f32.s32 %v557_v31 }
 0xa00   :  { %v561_v34 = vadd.s32 %v560_v32, %v558_v33 }
 0xa02   :  { %1940 = vst.msk [vmem:[%s2896_s5 + $0x2] sm:$0x3] %vm344_vm7, %v561_v34  ;;  %vm564_vm11 = vcmp.eq.s32.totalorder %v2435_v2, %v561_v34 }
 0xa03   :  { %v1941_v36 = vsel %vm564_vm11, 1.0, %v2380_v1 }
 0xa04   :  { %2092 = vmatmul.mubr.msk.f32.vlgmr.msra.gmra.mxu1 %vm143_vm2, %v1941_v36 }
 0xa05   :  { %2095 = vmatpush3.msra.mxu1 %v2438_v3  ;;  %2102 = vmatprep.mubr.msk.f32.mxu1 %vm2381_vm0, %v2380_v1 }
 0xa06   :  { %2096 = vmatprep.subr.mxu1 %v2380_v1 }
 0xa07   :  { %2097 = vmatpush3.msra.mxu1 %v2440_v4 }
 0xa08   :  { %2098 = vmatprep.subr.mxu1 %v2380_v1 }
 0xa09   :  { %2099 = vmatpush3.msra.mxu1 %v2446_v6 }
 0xa0a   :  { %2100 = vmatprep.subr.mxu1 %v2380_v1 }
 0xa0b   :  { %2101 = vmatpush3.msra.mxu1 %v2455_v9 }
 0xa0c   :  { %2123 = vmatprep.subr.mxu1 %v2380_v1 }
 0xac4   :  { %v655_v37 = vpop.f32.mrf.mxu1 }
 0xac5   :  { %v659_v40 = vadd.f32 %v655_v37, %v2555_v18 }
 0xac6   :  { %v2093_v41 = vpop.f32.mrf.mxu1 }
 0xac7   :  { %v1943_v42 = vmul.f32 -1.442695, %v659_v40 }
 0xac9   :  { %2219 = vpow2.f32 %v1943_v42 }
 0xad6   :  { %v2220_v43 = vpop.eup %2219 }
 0xad7   :  { %v663_v44 = vadd.f32 1.0, %v2220_v43 }
 0xad9   :  { %2221 = vrcp.f32 %v663_v44 }
 0xae6   :  { %v2222_v45 = vpop.eup %2221 }
 0xae7   :  { %v670_v47 = vmul.f32 %v2222_v45, %v668_v46  ;;  %v677_v51 = vsub.f32 1.0, %v2222_v45  ;;  %v683_v53 = vmul.f32 %v2222_v45, %v2543_v15 }
 0xae9   :  { %672 = vrot.lane.b32.xlu0 %v670_v47, %s2382_s10 }
 0xb5b   :  { %v673_v48 = vpop.permute.xlu0 %672 }
 0xb5c   :  { %v675_v49 = vadd.f32 %v673_v48, %v655_v37 }
 0xb5e   :  { %2223 = vtanh.f32 %v675_v49 }
 0xb6b   :  { %v2224_v50 = vpop.eup %2223 }
 0xb6c   :  { %679 = vrot.lane.b32.xlu1 %v2224_v50, %s2383_s11 }
 0xbde   :  { %v680_v52 = vpop.permute.xlu1 %679 }
 0xbdf   :  { %v682_v54 = vmul.f32 %v680_v52, %v677_v51 }
 0xbe1   :  { %v2588_v55 = vadd.f32 %v683_v53, %v682_v54 }
 0xbe3   :  { %686 = vrot.lane.b32.xlu1 %v2588_v55, %s2383_s11 }
 0xc55   :  { %v687_v56 = vpop.permute.xlu1 %686 }
 0xc56   :  { %2103 = vmatmul.mubr.msk.f32.vlgmr.msra.gmra.mxu1 %vm66_vm3, %v687_v56 }
 0xc57   :  { %2124 = vmatpush3.msra.mxu1 %v2443_v5  ;;  %2127 = vmatprep.mubr.msk.f32.mxu1 %vm2381_vm0, %v2380_v1 }
 0xc58   :  { %2125 = vmatprep.subr.mxu1 %v2380_v1 }
 0xc59   :  { %2126 = vmatpush3.msra.mxu1 %v2449_v7 }
 0xc5a   :  { %2130 = vmatprep.subr.mxu1 %v2380_v1 }
 0xd16   :  { %v756_v57 = vpop.f32.mrf.mxu1 }
 0xd17   :  { %v2600_v58 = vadd.f32 %v2491_v12, %v756_v57 }
 0xd18   :  { %v2104_v59 = vpop.f32.mrf.mxu1 }
 0xd19   :  { %v760_v60 = vsel %vm321_vm4, %v2600_v58, -inf }
 0xd1a   :  { %761 = vmax.xlane.f32.xlu0 %v760_v60 }
 0xda3   :  { %v2604_v61 = vpop.xlane.xlu0 %761 }
 0xda4   :  { %vm763_vm12 = vcmp.eq.f32.partialorder %v2600_v58, %v2604_v61 }
 0xda5   :  { %v764_v62 = vsel %vm763_vm12, %v2516_v38, 16 }
 0xda6   :  { %v765_v63 = vsel %vm321_vm4, %v764_v62, 2147483647 }
 0xda7   :  { %v767_v0 = vshra.s32 %v765_v63, 16  ;;  %v766_v10 = vand.u32 65535, %v765_v63 }
 0xda9   :  { %v769_v8 = vcvt.s32.f32 %v767_v0  ;;  %v768_v13 = vcvt.s32.f32 %v766_v10 }
 0xdab   :  { %770 = vmin.xlane.f32.xlu1 %v769_v8 }
 0xe34   :  { %v771_v11 = vpop.xlane.xlu1 %770 }
 0xe35   :  { %vm772_vm13 = vcmp.eq.f32.partialorder %v769_v8, %v771_v11  ;;  %v777_v15 = vcvt.f32.s32 %v771_v11 }
 0xe36   :  { %v773_v14 = vsel %vm772_vm13, %v768_v13, inf }
 0xe37   :  { %774 = vmin.xlane.f32.xlu0 %v773_v14  ;;  %v778_v17 = vshll.u32 %v777_v15, 16 }
 0xe4d   :  { %885 = vrot.lane.b32.xlu0 %v2600_v58, %s2382_s10 }
 0xec0   :  { %v775_v16 = vpop.xlane.xlu0 %774 }
 0xec1   :  { %v776_v19 = vcvt.f32.s32 %v775_v16 }
 0xec3   :  { %v779_v20 = vadd.s32 %v778_v17, %v776_v19 }
 0xec4   :  { %v886_v30 = vpop.permute.xlu0 %885 }
 0xec5   :  { %1945 = vst.msk [vmem:[%s2896_s5 + $0x4] sm:$0x3] %vm344_vm7, %v779_v20  ;;  %vm782_vm14 = vcmp.eq.s32.totalorder %v2435_v2, %v779_v20 }
 0xec6   :  { %v1946_v22 = vsel %vm782_vm14, 1.0, %v2380_v1 }
 0xec7   :  { %2110 = vmatmul.mubr.msk.f32.vlgmr.msra.gmra.mxu0 %vm143_vm2, %v1946_v22 }
 0xec8   :  { %2113 = vmatpush3.msra.mxu0 %v2438_v3  ;;  %2120 = vmatprep.mubr.msk.f32.mxu0 %vm2381_vm0, %v2380_v1 }
 0xec9   :  { %2114 = vmatprep.subr.mxu0 %v2380_v1 }
 0xeca   :  { %2115 = vmatpush3.msra.mxu0 %v2440_v4 }
 0xecb   :  { %2116 = vmatprep.subr.mxu0 %v2380_v1 }
 0xecc   :  { %2117 = vmatpush3.msra.mxu0 %v2446_v6 }
 0xecd   :  { %2118 = vmatprep.subr.mxu0 %v2380_v1 }
 0xece   :  { %2119 = vmatpush3.msra.mxu0 %v2455_v9 }
 0xecf   :  { %2141 = vmatprep.subr.mxu0 %v2380_v1 }
 0xf87   :  { %v873_v23 = vpop.f32.mrf.mxu0 }
 0xf88   :  { %v877_v24 = vadd.f32 %v873_v23, %v2600_v58 }
 0xf89   :  { %v2111_v25 = vpop.f32.mrf.mxu0 }
 0xf8a   :  { %v1948_v26 = vmul.f32 -1.442695, %v877_v24 }
 0xf8c   :  { %2225 = vpow2.f32 %v1948_v26 }
 0xf99   :  { %v2226_v27 = vpop.eup %2225 }
 0xf9a   :  { %v881_v28 = vadd.f32 1.0, %v2226_v27 }
 0xf9c   :  { %2227 = vrcp.f32 %v881_v28 }
 0xfa9   :  { %v2228_v29 = vpop.eup %2227 }
 0xfaa   :  { %v888_v31 = vmul.f32 %v2228_v29, %v886_v30  ;;  %v895_v36 = vsub.f32 1.0, %v2228_v29  ;;  %v901_v40 = vmul.f32 %v2228_v29, %v2588_v55 }
 0xfac   :  { %890 = vrot.lane.b32.xlu1 %v888_v31, %s2382_s10 }
0x101e   :  { %v891_v32 = vpop.permute.xlu1 %890 }
0x101f   :  { %v893_v33 = vadd.f32 %v891_v32, %v873_v23 }
0x1021   :  { %2229 = vtanh.f32 %v893_v33 }
0x102e   :  { %v2230_v34 = vpop.eup %2229 }
0x102f   :  { %897 = vrot.lane.b32.xlu1 %v2230_v34, %s2383_s11 }
0x10a1   :  { %v898_v37 = vpop.permute.xlu1 %897 }
0x10a2   :  { %v900_v41 = vmul.f32 %v898_v37, %v895_v36 }
0x10a4   :  { %v2633_v42 = vadd.f32 %v901_v40, %v900_v41 }
0x10a6   :  { %904 = vrot.lane.b32.xlu0 %v2633_v42, %s2383_s11 }
0x1118   :  { %v905_v43 = vpop.permute.xlu0 %904 }
0x1119   :  { %2121 = vmatmul.mubr.msk.f32.vlgmr.msra.gmra.mxu0 %vm66_vm3, %v905_v43 }
0x111a   :  { %2142 = vmatpush3.msra.mxu0 %v2443_v5  ;;  %2145 = vmatprep.mubr.msk.f32.mxu0 %vm2381_vm0, %v2380_v1 }
0x111b   :  { %2143 = vmatprep.subr.mxu0 %v2380_v1 }
0x111c   :  { %2144 = vmatpush3.msra.mxu0 %v2449_v7 }
0x111d   :  { %2148 = vmatprep.subr.mxu0 %v2380_v1 }
0x11d9   :  { %v974_v44 = vpop.f32.mrf.mxu0 }
0x11da   :  { %v2645_v45 = vadd.f32 %v2491_v12, %v974_v44 }
0x11db   :  { %v2122_v46 = vpop.f32.mrf.mxu0 }
0x11dc   :  { %v978_v47 = vsel %vm321_vm4, %v2645_v45, -inf }
0x11dd   :  { %979 = vmax.xlane.f32.xlu1 %v978_v47 }
0x11ee   :  { %1103 = vrot.lane.b32.xlu1 %v2645_v45, %s2382_s10 }
0x1266   :  { %v2651_v48 = vpop.xlane.xlu1 %979 }
0x1267   :  { %vm981_vm15 = vcmp.eq.f32.partialorder %v2645_v45, %v2651_v48 }
0x1268   :  { %v982_v49 = vsel %vm981_vm15, %v2516_v38, 16 }
0x1269   :  { %v983_v50 = vsel %vm321_vm4, %v982_v49, 2147483647 }
0x126a   :  { %v985_v51 = vshra.s32 %v983_v50, 16  ;;  %v984_v53 = vand.u32 65535, %v983_v50  ;;  %v1104_v17 = vpop.permute.xlu1 %1103 }
0x126c   :  { %v987_v52 = vcvt.s32.f32 %v985_v51  ;;  %v986_v55 = vcvt.s32.f32 %v984_v53 }
0x126e   :  { %988 = vmin.xlane.f32.xlu0 %v987_v52 }
0x12f7   :  { %v989_v54 = vpop.xlane.xlu0 %988 }
0x12f8   :  { %vm990_vm1 = vcmp.eq.f32.partialorder %v987_v52, %v989_v54  ;;  %v995_v57 = vcvt.f32.s32 %v989_v54 }
0x12f9   :  { %v991_v56 = vsel %vm990_vm1, %v986_v55, inf }
0x12fa   :  { %992 = vmin.xlane.f32.xlu0 %v991_v56  ;;  %v996_v60 = vshll.u32 %v995_v57, 16 }
0x1383   :  { %v993_v59 = vpop.xlane.xlu0 %992 }
0x1384   :  { %v994_v62 = vcvt.f32.s32 %v993_v59 }
0x1386   :  { %v997_v63 = vadd.s32 %v996_v60, %v994_v62 }
0x1388   :  { %1950 = vst.msk [vmem:[%s2896_s5 + $0x6] sm:$0x3] %vm344_vm7, %v997_v63  ;;  %vm1000_vm5 = vcmp.eq.s32.totalorder %v2435_v2, %v997_v63 }
0x1389   :  { %v1951_v0 = vsel %vm1000_vm5, 1.0, %v2380_v1 }
0x138a   :  { %2128 = vmatmul.mubr.msk.f32.vlgmr.msra.gmra.mxu1 %vm143_vm2, %v1951_v0 }
0x138b   :  { %2131 = vmatpush3.msra.mxu1 %v2438_v3  ;;  %2138 = vmatprep.mubr.msk.f32.mxu1 %vm2381_vm0, %v2380_v1 }
0x138c   :  { %2132 = vmatprep.subr.mxu1 %v2380_v1 }
0x138d   :  { %2133 = vmatpush3.msra.mxu1 %v2440_v4 }
0x138e   :  { %2134 = vmatprep.subr.mxu1 %v2380_v1 }
0x138f   :  { %2135 = vmatpush3.msra.mxu1 %v2446_v6 }
0x1390   :  { %2136 = vmatprep.subr.mxu1 %v2380_v1 }
0x1391   :  { %2137 = vmatpush3.msra.mxu1 %v2455_v9 }
0x1392   :  { %2159 = vmatprep.subr.mxu1 %v2380_v1 }
0x144a   :  { %v1091_v8 = vpop.f32.mrf.mxu1 }
0x144b   :  { %v1095_v10 = vadd.f32 %v1091_v8, %v2645_v45 }
0x144c   :  { %v2129_v11 = vpop.f32.mrf.mxu1 }
0x144d   :  { %v1953_v13 = vmul.f32 -1.442695, %v1095_v10 }
0x144f   :  { %2231 = vpow2.f32 %v1953_v13 }
0x145c   :  { %v2232_v14 = vpop.eup %2231 }
0x145d   :  { %v1099_v15 = vadd.f32 1.0, %v2232_v14 }
0x145f   :  { %2233 = vrcp.f32 %v1099_v15 }
0x146c   :  { %v2234_v16 = vpop.eup %2233 }
0x146d   :  { %v1106_v19 = vmul.f32 %v2234_v16, %v1104_v17  ;;  %v1113_v24 = vsub.f32 1.0, %v2234_v16  ;;  %v1119_v26 = vmul.f32 %v2234_v16, %v2633_v42 }
0x146f   :  { %1108 = vrot.lane.b32.xlu0 %v1106_v19, %s2382_s10 }
0x14e1   :  { %v1109_v20 = vpop.permute.xlu0 %1108 }
0x14e2   :  { %v1111_v22 = vadd.f32 %v1109_v20, %v1091_v8 }
0x14e4   :  { %2235 = vtanh.f32 %v1111_v22 }
0x14f1   :  { %v2236_v23 = vpop.eup %2235 }
0x14f2   :  { %1115 = vrot.lane.b32.xlu1 %v2236_v23, %s2383_s11 }
0x1564   :  { %v1116_v25 = vpop.permute.xlu1 %1115 }
0x1565   :  { %v1118_v27 = vmul.f32 %v1116_v25, %v1113_v24 }
0x1567   :  { %v2678_v28 = vadd.f32 %v1119_v26, %v1118_v27 }
0x1569   :  { %1122 = vrot.lane.b32.xlu1 %v2678_v28, %s2383_s11 }
0x15db   :  { %v1123_v29 = vpop.permute.xlu1 %1122 }
0x15dc   :  { %2139 = vmatmul.mubr.msk.f32.vlgmr.msra.gmra.mxu1 %vm66_vm3, %v1123_v29 }
0x15dd   :  { %2160 = vmatpush3.msra.mxu1 %v2443_v5  ;;  %2163 = vmatprep.mubr.msk.f32.mxu1 %vm2381_vm0, %v2380_v1 }
0x15de   :  { %2161 = vmatprep.subr.mxu1 %v2380_v1 }
0x15df   :  { %2162 = vmatpush3.msra.mxu1 %v2449_v7 }
0x15e0   :  { %2166 = vmatprep.subr.mxu1 %v2380_v1 }
0x169c   :  { %v1192_v30 = vpop.f32.mrf.mxu1 }
0x169d   :  { %v2690_v31 = vadd.f32 %v2491_v12, %v1192_v30 }
0x169e   :  { %v2140_v32 = vpop.f32.mrf.mxu1 }
0x169f   :  { %v1196_v33 = vsel %vm321_vm4, %v2690_v31, -inf }
0x16a0   :  { %1197 = vmax.xlane.f32.xlu0 %v1196_v33 }
0x1729   :  { %v2694_v34 = vpop.xlane.xlu0 %1197 }
0x172a   :  { %vm1199_vm6 = vcmp.eq.f32.partialorder %v2690_v31, %v2694_v34 }
0x172b   :  { %v1200_v36 = vsel %vm1199_vm6, %v2516_v38, 16 }
0x172c   :  { %v1201_v37 = vsel %vm321_vm4, %v1200_v36, 2147483647 }
0x172d   :  { %v1203_v40 = vshra.s32 %v1201_v37, 16  ;;  %v1202_v42 = vand.u32 65535, %v1201_v37 }
0x172f   :  { %v1205_v41 = vcvt.s32.f32 %v1203_v40  ;;  %v1204_v44 = vcvt.s32.f32 %v1202_v42 }
0x1731   :  { %1206 = vmin.xlane.f32.xlu1 %v1205_v41 }
0x17ba   :  { %v1207_v43 = vpop.xlane.xlu1 %1206 }
0x17bb   :  { %vm1208_vm8 = vcmp.eq.f32.partialorder %v1205_v41, %v1207_v43  ;;  %v1213_v47 = vcvt.f32.s32 %v1207_v43 }
0x17bc   :  { %v1209_v46 = vsel %vm1208_vm8, %v1204_v44, inf }
0x17bd   :  { %1210 = vmin.xlane.f32.xlu0 %v1209_v46  ;;  %v1214_v50 = vshll.u32 %v1213_v47, 16 }
0x17d3   :  { %1321 = vrot.lane.b32.xlu0 %v2690_v31, %s2382_s10 }
0x1846   :  { %v1211_v49 = vpop.xlane.xlu0 %1210 }
0x1847   :  { %v1212_v51 = vcvt.f32.s32 %v1211_v49 }
0x1849   :  { %v1215_v52 = vadd.s32 %v1214_v50, %v1212_v51 }
0x184a   :  { %v1322_v63 = vpop.permute.xlu0 %1321 }
0x184b   :  { %1955 = vst.msk [vmem:[%s2896_s5 + $0x8] sm:$0x3] %vm344_vm7, %v1215_v52  ;;  %vm1218_vm9 = vcmp.eq.s32.totalorder %v2435_v2, %v1215_v52 }
0x184c   :  { %v1956_v53 = vsel %vm1218_vm9, 1.0, %v2380_v1 }
0x184d   :  { %2146 = vmatmul.mubr.msk.f32.vlgmr.msra.gmra.mxu0 %vm143_vm2, %v1956_v53 }
0x184e   :  { %2149 = vmatpush3.msra.mxu0 %v2438_v3  ;;  %2156 = vmatprep.mubr.msk.f32.mxu0 %vm2381_vm0, %v2380_v1 }
0x184f   :  { %2150 = vmatprep.subr.mxu0 %v2380_v1 }
0x1850   :  { %2151 = vmatpush3.msra.mxu0 %v2440_v4 }
0x1851   :  { %2152 = vmatprep.subr.mxu0 %v2380_v1 }
0x1852   :  { %2153 = vmatpush3.msra.mxu0 %v2446_v6 }
0x1853   :  { %2154 = vmatprep.subr.mxu0 %v2380_v1 }
0x1854   :  { %2155 = vmatpush3.msra.mxu0 %v2455_v9 }
0x1855   :  { %2177 = vmatprep.subr.mxu0 %v2380_v1 }
0x190d   :  { %v1309_v54 = vpop.f32.mrf.mxu0 }
0x190e   :  { %v1313_v55 = vadd.f32 %v1309_v54, %v2690_v31 }
0x190f   :  { %v2147_v56 = vpop.f32.mrf.mxu0 }
0x1910   :  { %v1958_v57 = vmul.f32 -1.442695, %v1313_v55 }
0x1912   :  { %2237 = vpow2.f32 %v1958_v57 }
0x191f   :  { %v2238_v59 = vpop.eup %2237 }
0x1920   :  { %v1317_v60 = vadd.f32 1.0, %v2238_v59 }
0x1922   :  { %2239 = vrcp.f32 %v1317_v60 }
0x192f   :  { %v2240_v62 = vpop.eup %2239 }
0x1930   :  { %v1324_v0 = vmul.f32 %v2240_v62, %v1322_v63  ;;  %v1331_v13 = vsub.f32 1.0, %v2240_v62  ;;  %v1337_v15 = vmul.f32 %v2240_v62, %v2678_v28 }
0x1932   :  { %1326 = vrot.lane.b32.xlu1 %v1324_v0, %s2382_s10 }
0x19a4   :  { %v1327_v8 = vpop.permute.xlu1 %1326 }
0x19a5   :  { %v1329_v10 = vadd.f32 %v1327_v8, %v1309_v54 }
0x19a7   :  { %2241 = vtanh.f32 %v1329_v10 }
0x19b4   :  { %v2242_v11 = vpop.eup %2241 }
0x19b5   :  { %1333 = vrot.lane.b32.xlu1 %v2242_v11, %s2383_s11 }
0x1a27   :  { %v1334_v14 = vpop.permute.xlu1 %1333 }
0x1a28   :  { %v1336_v16 = vmul.f32 %v1334_v14, %v1331_v13 }
0x1a2a   :  { %v2723_v17 = vadd.f32 %v1337_v15, %v1336_v16 }
0x1a2c   :  { %1340 = vrot.lane.b32.xlu0 %v2723_v17, %s2383_s11 }
0x1a9e   :  { %v1341_v19 = vpop.permute.xlu0 %1340 }
0x1a9f   :  { %2157 = vmatmul.mubr.msk.f32.vlgmr.msra.gmra.mxu0 %vm66_vm3, %v1341_v19 }
0x1aa0   :  { %2178 = vmatpush3.msra.mxu0 %v2443_v5  ;;  %2181 = vmatprep.mubr.msk.f32.mxu0 %vm2381_vm0, %v2380_v1 }
0x1aa1   :  { %2179 = vmatprep.subr.mxu0 %v2380_v1 }
0x1aa2   :  { %2180 = vmatpush3.msra.mxu0 %v2449_v7 }
0x1aa3   :  { %2184 = vmatprep.subr.mxu0 %v2380_v1 }
0x1b5f   :  { %v1410_v20 = vpop.f32.mrf.mxu0 }
0x1b60   :  { %v2735_v22 = vadd.f32 %v2491_v12, %v1410_v20 }
0x1b61   :  { %v2158_v23 = vpop.f32.mrf.mxu0 }
0x1b62   :  { %v1414_v24 = vsel %vm321_vm4, %v2735_v22, -inf }
0x1b63   :  { %1415 = vmax.xlane.f32.xlu1 %v1414_v24 }
0x1b74   :  { %1539 = vrot.lane.b32.xlu1 %v2735_v22, %s2382_s10 }
0x1bec   :  { %v2741_v5 = vpop.xlane.xlu1 %1415 }
0x1bed   :  { %vm1417_vm10 = vcmp.eq.f32.partialorder %v2735_v22, %v2741_v5 }
0x1bee   :  { %v1418_v7 = vsel %vm1417_vm10, %v2516_v38, 16 }
0x1bef   :  { %v1419_v25 = vsel %vm321_vm4, %v1418_v7, 2147483647 }
0x1bf0   :  { %v1421_v26 = vshra.s32 %v1419_v25, 16  ;;  %v1420_v28 = vand.u32 65535, %v1419_v25  ;;  %v1540_v52 = vpop.permute.xlu1 %1539 }
0x1bf2   :  { %v1423_v27 = vcvt.s32.f32 %v1421_v26  ;;  %v1422_v30 = vcvt.s32.f32 %v1420_v28 }
0x1bf4   :  { %1424 = vmin.xlane.f32.xlu0 %v1423_v27 }
0x1c7d   :  { %v1425_v29 = vpop.xlane.xlu0 %1424 }
0x1c7e   :  { %vm1426_vm11 = vcmp.eq.f32.partialorder %v1423_v27, %v1425_v29  ;;  %v1431_v33 = vcvt.f32.s32 %v1425_v29 }
0x1c7f   :  { %v1427_v32 = vsel %vm1426_vm11, %v1422_v30, inf }
0x1c80   :  { %1428 = vmin.xlane.f32.xlu0 %v1427_v32  ;;  %v1432_v37 = vshll.u32 %v1431_v33, 16 }
0x1d09   :  { %v1429_v36 = vpop.xlane.xlu0 %1428 }
0x1d0a   :  { %v1430_v40 = vcvt.f32.s32 %v1429_v36 }
0x1d0c   :  { %v1433_v41 = vadd.s32 %v1432_v37, %v1430_v40 }
0x1d0e   :  { %1960 = vst.msk [vmem:[%s2896_s5 + $0xa] sm:$0x3] %vm344_vm7, %v1433_v41  ;;  %vm1436_vm12 = vcmp.eq.s32.totalorder %v2435_v2, %v1433_v41 }
0x1d0f   :  { %v1961_v42 = vsel %vm1436_vm12, 1.0, %v2380_v1 }
0x1d10   :  { %2164 = vmatmul.mubr.msk.f32.vlgmr.msra.gmra.mxu1 %vm143_vm2, %v1961_v42 }
0x1d11   :  { %2167 = vmatpush3.msra.mxu1 %v2438_v3  ;;  %2174 = vmatprep.mubr.msk.f32.mxu1 %vm2381_vm0, %v2380_v1 }
0x1d12   :  { %2168 = vmatprep.subr.mxu1 %v2380_v1 }
0x1d13   :  { %2169 = vmatpush3.msra.mxu1 %v2440_v4 }
0x1d14   :  { %2170 = vmatprep.subr.mxu1 %v2380_v1 }
0x1d15   :  { %2171 = vmatpush3.msra.mxu1 %v2446_v6 }
0x1d16   :  { %2172 = vmatprep.subr.mxu1 %v2380_v1 }
0x1d17   :  { %2173 = vmatpush3.msra.mxu1 %v2455_v9 }
0x1dd0   :  { %v1527_v43 = vpop.f32.mrf.mxu1 }
0x1dd1   :  { %v1531_v44 = vadd.f32 %v1527_v43, %v2735_v22 }
0x1dd2   :  { %v2165_v46 = vpop.f32.mrf.mxu1 }
0x1dd3   :  { %v1963_v47 = vmul.f32 -1.442695, %v1531_v44 }
0x1dd5   :  { %2243 = vpow2.f32 %v1963_v47 }
0x1de2   :  { %v2244_v49 = vpop.eup %2243 }
0x1de3   :  { %v1535_v50 = vadd.f32 1.0, %v2244_v49 }
0x1de5   :  { %2245 = vrcp.f32 %v1535_v50 }
0x1df2   :  { %v2246_v51 = vpop.eup %2245 }
0x1df3   :  { %v1542_v53 = vmul.f32 %v2246_v51, %v1540_v52  ;;  %v1549_v57 = vsub.f32 1.0, %v2246_v51  ;;  %v1555_v60 = vmul.f32 %v2246_v51, %v2723_v17 }
0x1df5   :  { %1544 = vrot.lane.b32.xlu0 %v1542_v53, %s2382_s10 }
0x1e67   :  { %v1545_v54 = vpop.permute.xlu0 %1544 }
0x1e68   :  { %v1547_v55 = vadd.f32 %v1545_v54, %v1527_v43  ;;  %v2811_v54 = vsub.f32 %v2690_v31, %v2694_v34 }
0x1e6a   :  { %2247 = vtanh.f32 %v1547_v55  ;;  %v1222_v55 = vmul.f32 1.442695, %v2811_v54 }
0x1e77   :  { %v2248_v56 = vpop.eup %2247 }
0x1e78   :  { %1551 = vrot.lane.b32.xlu1 %v2248_v56, %s2383_s11 }
0x1eea   :  { %v1552_v59 = vpop.permute.xlu1 %1551 }
0x1eeb   :  { %v1554_v62 = vmul.f32 %v1552_v59, %v1549_v57 }
0x1eed   :  { %v1556_v63 = vadd.f32 %v1555_v60, %v1554_v62 }
0x1eef   :  { %1558 = vrot.lane.b32.xlu1 %v1556_v63, %s2383_s11 }
0x1f61   :  { %v1559_v0 = vpop.permute.xlu1 %1558 }
0x1f62   :  { %2175 = vmatmul.mubr.msk.f32.vlgmr.msra.gmra.mxu1 %vm66_vm3, %v1559_v0 }
0x2022   :  { %v1628_v8 = vpop.f32.mrf.mxu1 }
0x2023   :  { %v2770_v10 = vadd.f32 %v2491_v12, %v1628_v8 }
0x2024   :  { %v2176_v11 = vpop.f32.mrf.mxu1 }
0x2025   :  { %v1632_v13 = vsel %vm321_vm4, %v2770_v10, -inf }
0x2026   :  { %1633 = vmax.xlane.f32.xlu0 %v1632_v13 }
0x20af   :  { %v2774_v14 = vpop.xlane.xlu0 %1633 }
0x20b0   :  { %vm1635_vm13 = vcmp.eq.f32.partialorder %v2770_v10, %v2774_v14  ;;  %v2816_v56 = vsub.f32 %v2770_v10, %v2774_v14  ;;  %v2834_v14 = vsub.f32 %v2645_v45, %v2651_v48 }
0x20b1   :  { %v1636_v15 = vsel %vm1635_vm13, %v2516_v38, 16 }
0x20b2   :  { %v1637_v16 = vsel %vm321_vm4, %v1636_v15, 2147483647  ;;  %v1658_v57 = vmul.f32 1.442695, %v2816_v56  ;;  %v1004_v15 = vmul.f32 1.442695, %v2834_v14 }
0x20b3   :  { %v1639_v17 = vshra.s32 %v1637_v16, 16  ;;  %v1638_v20 = vand.u32 65535, %v1637_v16  ;;  %v2839_v16 = vsub.f32 %v2735_v22, %v2741_v5 }
0x20b5   :  { %v1641_v19 = vcvt.s32.f32 %v1639_v17  ;;  %v1640_v23 = vcvt.s32.f32 %v1638_v20 }
0x20b7   :  { %1642 = vmin.xlane.f32.xlu1 %v1641_v19 }
0x2140   :  { %v1643_v12 = vpop.xlane.xlu1 %1642 }
0x2141   :  { %vm1644_vm14 = vcmp.eq.f32.partialorder %v1641_v19, %v1643_v12  ;;  %v1649_v7 = vcvt.f32.s32 %v1643_v12 }
0x2142   :  { %v1645_v24 = vsel %vm1644_vm14, %v1640_v23, inf }
0x2143   :  { %1646 = vmin.xlane.f32.xlu0 %v1645_v24  ;;  %v1650_v26 = vshll.u32 %v1649_v7, 16 }
0x2159   :  { %1757 = vrot.lane.b32.xlu0 %v2770_v10, %s2382_s10 }
0x21cc   :  { %v1647_v25 = vpop.xlane.xlu0 %1646 }
0x21cd   :  { %v1648_v27 = vcvt.f32.s32 %v1647_v25 }
0x21cf   :  { %v1651_v28 = vadd.s32 %v1650_v26, %v1648_v27 }
0x21d0   :  { %v1758_v40 = vpop.permute.xlu0 %1757 }
0x21d1   :  { %1965 = vst.msk [vmem:[%s2896_s5 + $0xc] sm:$0x3] %vm344_vm7, %v1651_v28  ;;  %vm1654_vm15 = vcmp.eq.s32.totalorder %v2435_v2, %v1651_v28 }
0x21d2   :  { %v1966_v29 = vsel %vm1654_vm15, 1.0, %v2380_v1 }
0x21d3   :  { %2182 = vmatmul.mubr.msk.f32.vlgmr.msra.gmra.mxu0 %vm143_vm2, %v1966_v29  ;;  %vm356_vm2 = vcmask 123904  }
0x21d4   :  { %2185 = vmatpush3.msra.mxu0 %v2438_v3  ;;  %2192 = vmatprep.mubr.msk.f32.mxu0 %vm2381_vm0, %v2380_v1  ;;  %vm1892_vm0 = vcmask 254976  }
0x21d5   :  { %2186 = vmatprep.subr.mxu0 %v2380_v1 }
0x21d6   :  { %2187 = vmatpush3.msra.mxu0 %v2440_v4 }
0x21d7   :  { %2188 = vmatprep.subr.mxu0 %v2380_v1 }
0x21d8   :  { %2189 = vmatpush3.msra.mxu0 %v2446_v6 }
0x21d9   :  { %2190 = vmatprep.subr.mxu0 %v2380_v1 }
0x21da   :  { %2191 = vmatpush3.msra.mxu0 %v2455_v9  ;;  %v349_v9 = vsub.f32 %v2512_v35, %v2518_v39  ;;  %v567_v39 = vsub.f32 %v2555_v18, %v2561_v21 }
0x21dc   :  { %v350_v42 = vmul.f32 1.442695, %v349_v9  ;;  %v568_v53 = vmul.f32 1.442695, %v567_v39 }
0x2293   :  { %v1745_v2 = vpop.f32.mrf.mxu0 }
0x2294   :  { %v1749_v30 = vadd.f32 %v1745_v2, %v2770_v10  ;;  %v2828_v10 = vsub.f32 %v2600_v58, %v2604_v61  ;;  %v1440_v58 = vmul.f32 1.442695, %v2839_v16 }
0x2295   :  { %v2183_v32 = vpop.f32.mrf.mxu0 }
0x2296   :  { %v1968_v3 = vmul.f32 -1.442695, %v1749_v30  ;;  %v786_v13 = vmul.f32 1.442695, %v2828_v10 }
0x2298   :  { %2249 = vpow2.f32 %v1968_v3 }
0x22a5   :  { %v2250_v33 = vpop.eup %2249 }
0x22a6   :  { %v1753_v36 = vadd.f32 1.0, %v2250_v33 }
0x22a8   :  { %2251 = vrcp.f32 %v1753_v36 }
0x22b5   :  { %v2252_v37 = vpop.eup %2251 }
0x22b6   :  { %v1760_v4 = vmul.f32 %v2252_v37, %v1758_v40  ;;  %v1767_v43 = vsub.f32 1.0, %v2252_v37  ;;  %v1773_v46 = vmul.f32 %v2252_v37, %v1556_v63  ;;  %v2287_v63 = vld [vmem:[%s2893_s2] ss:$0 sm:$0xff]  ;;  %s2385_s2 = smov [#allocation8]  }
0x22b7   :  { %s1914_s29 = sshll.u32 %s2385_s2, 4  ;;  %s1915_s29 = int_to_ptr.vmem [resolvable:$true] %s1914_s29 }
0x22b8   :  { %1762 = vrot.lane.b32.xlu1 %v1760_v4, %s2382_s10  ;;  %s2328_s30 = scalar_lea.vmem %s1915_s29, 32  ;;  %p2333_p11 = scmp.lt.s32.totalorder %s1915_s29, %s1915_s29 }
0x22b9   :  { %p2329_p10 = scmp.ne.s32.totalorder %s1915_s29, %s2328_s30  ;;  %p2334_p12 = scmp.lt.s32.totalorder %s2328_s30, %s2328_s30 }
0x22bb   :  { %p2335_p13 = por %p2334_p12, %p2333_p11 }
0x22bd   :  { %p2336_p0 = pnand %p2335_p13, %p2329_p10 }
0x232a   :  { %v1763_v41 = vpop.permute.xlu1 %1762 }
0x232b   :  { %v1765_v6 = vadd.f32 %v1763_v41, %v1745_v2 }
0x232d   :  { %2253 = vtanh.f32 %v1765_v6 }
0x232e   :  { %2255 = vpow2.f32 %v350_v42 }
0x232f   :  { %2257 = vpow2.f32 %v568_v53 }
0x2330   :  { %2259 = vpow2.f32 %v1222_v55 }
0x2331   :  { %2261 = vpow2.f32 %v1658_v57 }
0x233a   :  { %v2254_v1 = vpop.eup %2253 }
0x233b   :  { %1769 = vrot.lane.b32.xlu1 %v2254_v1, %s2383_s11  ;;  %v2256_v50 = vpop.eup %2255 }
0x233c   :  { %v2258_v59 = vpop.eup %2257 }
0x233d   :  { %v2260_v18 = vpop.eup %2259 }
0x233e   :  { %v2262_v21 = vpop.eup %2261 }
0x23ad   :  { %v1770_v44 = vpop.permute.xlu1 %1769 }
0x23ae   :  { %v1772_v47 = vmul.f32 %v1770_v44, %v1767_v43 }
0x23b0   :  { %v1774_v49 = vadd.f32 %v1773_v46, %v1772_v47 }
0x23b2   :  { %1776 = vrot.lane.b32.xlu0 %v1774_v49, %s2383_s11 }
0x23b6   :  { %353 = vrot.lane.b32.xlu0 %v2256_v50, %s2384_s12 }
0x2424   :  { %v1777_v51 = vpop.permute.xlu0 %1776 }
0x2425   :  { %2193 = vmatmul.mubr.msk.f32.vlgmr.msra.gmra.mxu0 %vm66_vm3, %v1777_v51  ;;  %1893 = vst.msk [vmem:[#allocation8] sm:$0x3] %vm1892_vm0, %v1777_v51 }
0x2428   :  { %v354_v52 = vpop.permute.xlu0 %353 }
0x2429   :  { %v357_v35 = vsel %vm356_vm2, %v354_v52, 0.0 }
0x242a   :  { %358 = vadd.xlane.f32.xlu0 %v357_v35 }
0x2440   :  { %571 = vrot.lane.b32.xlu0 %v2258_v59, %s2384_s12 }
0x2444   :  { %1225 = vrot.lane.b32.xlu0 %v2260_v18, %s2384_s12 }
0x2448   :  { %1661 = vrot.lane.b32.xlu0 %v2262_v21, %s2384_s12 }
0x24b3   :  { %v359_v31 = vpop.xlane.xlu0 %358 }
0x24b4   :  { %2263 = vlog2.f32 %v359_v31 }
0x24b5   :  { %2265 = vpow2.f32 %v786_v13 }
0x24b6   :  { %2267 = vpow2.f32 %v1004_v15 }
0x24b7   :  { %v572_v34 = vpop.permute.xlu0 %571  ;;  %2269 = vpow2.f32 %v1440_v58 }
0x24b8   :  { %v574_v60 = vsel %vm356_vm2, %v572_v34, 0.0 }
0x24b9   :  { %575 = vadd.xlane.f32.xlu0 %v574_v60 }
0x24bb   :  { %v1226_v22 = vpop.permute.xlu0 %1225 }
0x24bc   :  { %v1228_v33 = vsel %vm356_vm2, %v1226_v22, 0.0 }
0x24bf   :  { %v1662_v5 = vpop.permute.xlu0 %1661 }
0x24c0   :  { %v1664_v6 = vsel %vm356_vm2, %v1662_v5, 0.0 }
0x24c1   :  { %v2264_v17 = vpop.eup %2263 }
0x24c2   :  { %v361_v61 = vmul.f32 0.6931472, %v2264_v17  ;;  %v2266_v20 = vpop.eup %2265 }
0x24c3   :  { %v2268_v45 = vpop.eup %2267 }
0x24c4   :  { %v362_v19 = vsub.f32 %v349_v9, %v361_v61  ;;  %v2270_v48 = vpop.eup %2269 }
0x24e5   :  { %v1846_v62 = vpop.f32.mrf.mxu0 }
0x24e6   :  { %v1847_v0 = vadd.f32 %v2287_v63, %v1846_v62 }
0x24e7   :  { %v2194_v8 = vpop.f32.mrf.mxu0 }
0x24e8   :  { %v1850_v11 = vsel %vm321_vm4, %v1847_v0, -inf }
0x24e9   :  { %1851 = vmax.xlane.f32.xlu1 %v1850_v11 }
0x24fa   :  { %364 = vrot.lane.b32.xlu1 %v362_v19, %s2384_s12 }
0x24fe   :  { %789 = vrot.lane.b32.xlu1 %v2266_v20, %s2384_s12 }
0x2502   :  { %1007 = vrot.lane.b32.xlu1 %v2268_v45, %s2384_s12 }
0x2506   :  { %1443 = vrot.lane.b32.xlu1 %v2270_v48, %s2384_s12 }
0x2542   :  { %v576_v12 = vpop.xlane.xlu0 %575 }
0x2543   :  { %2271 = vlog2.f32 %v576_v12 }
0x2550   :  { %v2272_v26 = vpop.eup %2271 }
0x2551   :  { %v578_v27 = vmul.f32 0.6931472, %v2272_v26 }
0x2553   :  { %v579_v29 = vsub.f32 %v567_v39, %v578_v27 }
0x2572   :  { %v1852_v23 = vpop.xlane.xlu1 %1851 }
0x2573   :  { %v2846_v24 = vsub.f32 %v1847_v0, %v1852_v23  ;;  %vm1853_vm3 = vcmp.eq.f32.partialorder %v1847_v0, %v1852_v23 }
0x2574   :  { %v1854_v36 = vsel %vm1853_vm3, %v2516_v38, 16 }
0x2575   :  { %v1873_v7 = vmul.f32 1.442695, %v2846_v24  ;;  %v1855_v4 = vsel %vm321_vm4, %v1854_v36, 2147483647 }
0x2576   :  { %v365_v25 = vpop.permute.xlu1 %364  ;;  %v1857_v41 = vshra.s32 %v1855_v4, 16  ;;  %v1856_v60 = vand.u32 65535, %v1855_v4 }
0x2577   :  { %2273 = vpow2.f32 %v1873_v7  ;;  %367 = vst.msk [vmem:[#allocation7] sm:$0x3] %vm356_vm2, %v365_v25 }
0x2578   :  { %v1859_v1 = vcvt.s32.f32 %v1857_v41  ;;  %v1858_v63 = vcvt.s32.f32 %v1856_v60 }
0x257a   :  { %v790_v2 = vpop.permute.xlu1 %789 }
0x257b   :  { %v792_v30 = vsel %vm356_vm2, %v790_v2, 0.0 }
0x257e   :  { %v1008_v32 = vpop.permute.xlu1 %1007 }
0x257f   :  { %v1010_v3 = vsel %vm356_vm2, %v1008_v32, 0.0 }
0x2582   :  { %v1444_v37 = vpop.permute.xlu1 %1443 }
0x2583   :  { %v1446_v40 = vsel %vm356_vm2, %v1444_v37, 0.0 }
0x2584   :  { %v2274_v28 = vpop.eup %2273 }
0x2585   :  { %1876 = vrot.lane.b32.xlu1 %v2274_v28, %s2384_s12 }
0x2589   :  { %581 = vrot.lane.b32.xlu1 %v579_v29, %s2384_s12 }
0x25ad   :  { %793 = vadd.xlane.f32.xlu1 %v792_v30 }
0x25b1   :  { %1011 = vadd.xlane.f32.xlu1 %v1010_v3 }
0x25b5   :  { %1229 = vadd.xlane.f32.xlu1 %v1228_v33 }
0x25b9   :  { %1447 = vadd.xlane.f32.xlu1 %v1446_v40 }
0x25bd   :  { %1665 = vadd.xlane.f32.xlu1 %v1664_v6 }
0x25c1   :  { %1860 = vmin.xlane.f32.xlu1 %v1859_v1 }
0x25f7   :  { %v1877_v9 = vpop.permute.xlu1 %1876 }
0x25f8   :  { %v1879_v31 = vsel %vm356_vm2, %v1877_v9, 0.0 }
0x25fb   :  { %v582_v42 = vpop.permute.xlu1 %581 }
0x25fc   :  { %585 = vst.msk [vmem:[#allocation7 + $0x2] sm:$0x3] %vm356_vm2, %v582_v42 }
0x2636   :  { %v794_v43 = vpop.xlane.xlu1 %793 }
0x2637   :  { %2275 = vlog2.f32 %v794_v43 }
0x263a   :  { %v1012_v38 = vpop.xlane.xlu1 %1011 }
0x263b   :  { %2277 = vlog2.f32 %v1012_v38 }
0x263e   :  { %v1230_v44 = vpop.xlane.xlu1 %1229 }
0x263f   :  { %2279 = vlog2.f32 %v1230_v44 }
0x2642   :  { %v1448_v46 = vpop.xlane.xlu1 %1447 }
0x2643   :  { %2281 = vlog2.f32 %v1448_v46 }
0x2644   :  { %v2276_v47 = vpop.eup %2275 }
0x2645   :  { %v796_v49 = vmul.f32 0.6931472, %v2276_v47 }
0x2646   :  { %v1666_v21 = vpop.xlane.xlu1 %1665 }
0x2647   :  { %v797_v50 = vsub.f32 %v2828_v10, %v796_v49  ;;  %2283 = vlog2.f32 %v1666_v21 }
0x2648   :  { %v2278_v51 = vpop.eup %2277 }
0x2649   :  { %v1014_v52 = vmul.f32 0.6931472, %v2278_v51  ;;  %799 = vrot.lane.b32.xlu0 %v797_v50, %s2384_s12 }
0x264a   :  { %v1861_v34 = vpop.xlane.xlu1 %1860 }
0x264b   :  { %v1015_v35 = vsub.f32 %v2834_v14, %v1014_v52  ;;  %vm1862_vm4 = vcmp.eq.f32.partialorder %v1859_v1, %v1861_v34 }
0x264c   :  { %v2280_v39 = vpop.eup %2279 }
0x264d   :  { %v1232_v53 = vmul.f32 0.6931472, %v2280_v39  ;;  %1017 = vrot.lane.b32.xlu1 %v1015_v35, %s2384_s12 }
0x264f   :  { %v1233_v55 = vsub.f32 %v2811_v54, %v1232_v53  ;;  %v1863_v54 = vsel %vm1862_vm4, %v1858_v63, inf }
0x2650   :  { %v2282_v57 = vpop.eup %2281 }
0x2651   :  { %v1450_v59 = vmul.f32 0.6931472, %v2282_v57  ;;  %1235 = vrot.lane.b32.xlu1 %v1233_v55, %s2384_s12 }
0x2653   :  { %v1451_v18 = vsub.f32 %v2839_v16, %v1450_v59 }
0x2654   :  { %v2284_v62 = vpop.eup %2283 }
0x2655   :  { %1453 = vrot.lane.b32.xlu1 %v1451_v18, %s2384_s12  ;;  %v1668_v0 = vmul.f32 0.6931472, %v2284_v62 }
0x2657   :  { %v1669_v8 = vsub.f32 %v2816_v56, %v1668_v0 }
0x2668   :  { %1880 = vadd.xlane.f32.xlu0 %v1879_v31 }
0x2679   :  { %1864 = vmin.xlane.f32.xlu1 %v1863_v54 }
0x267e   :  { %1671 = vrot.lane.b32.xlu0 %v1669_v8, %s2384_s12 }
0x26bb   :  { %v800_v10 = vpop.permute.xlu0 %799 }
0x26bc   :  { %803 = vst.msk [vmem:[#allocation7 + $0x4] sm:$0x3] %vm356_vm2, %v800_v10 }
0x26bf   :  { %v1018_v11 = vpop.permute.xlu1 %1017 }
0x26c0   :  { %1021 = vst.msk [vmem:[#allocation7 + $0x6] sm:$0x3] %vm356_vm2, %v1018_v11 }
0x26c3   :  { %v1236_v13 = vpop.permute.xlu1 %1235 }
0x26c4   :  { %1239 = vst.msk [vmem:[#allocation7 + $0x8] sm:$0x3] %vm356_vm2, %v1236_v13 }
0x26c7   :  { %v1454_v14 = vpop.permute.xlu1 %1453 }
0x26c8   :  { %1457 = vst.msk [vmem:[#allocation7 + $0xa] sm:$0x3] %vm356_vm2, %v1454_v14 }
0x26f1   :  { %v1881_v15 = vpop.xlane.xlu0 %1880 }
0x26f2   :  { %2285 = vlog2.f32 %v1881_v15 }
0x26f5   :  { %v1672_v16 = vpop.permute.xlu0 %1671 }
0x26f6   :  { %1675 = vst.msk [vmem:[#allocation7 + $0xc] sm:$0x3] %vm356_vm2, %v1672_v16 }
0x26f7   :  { %2339 = shalt.err (!%p2336_p0)
}
0x26f8   :  { %1917 = dma.vmem_to_hbm [thread:$0]  %s1915_s29, 32, %s2897_s6, [#allocation9]   ;;  %v1867_v17 = vcvt.f32.s32 %v1861_v34 }
0x26f9   :  { %s2386_s3 = smov [#allocation7]  }
0x26fa   :  { %v1868_v20 = vshll.u32 %v1867_v17, 16  ;;  %s1899_s9 = sshll.u32 %s2386_s3, 4  ;;  %s1900_s9 = int_to_ptr.vmem [resolvable:$true] %s1899_s9 }
0x26fb   :  { %s2348_s6 = scalar_lea.vmem %s1900_s9, 256  ;;  %p2353_p2 = scmp.lt.s32.totalorder %s1900_s9, %s1900_s9 }
0x26fc   :  { %p2349_p1 = scmp.ne.s32.totalorder %s1900_s9, %s2348_s6  ;;  %p2354_p3 = scmp.lt.s32.totalorder %s2348_s6, %s2348_s6 }
0x26fe   :  { %p2355_p4 = por %p2354_p3, %p2353_p2 }
0x26ff   :  { %v2286_v56 = vpop.eup %2285 }
0x2700   :  { %v1883_v58 = vmul.f32 0.6931472, %v2286_v56  ;;  %p2356_p5 = pnand %p2355_p4, %p2349_p1 }
0x2702   :  { %v1865_v61 = vpop.xlane.xlu1 %1864  ;;  %v1884_v19 = vsub.f32 %v2846_v24, %v1883_v58 }
0x2703   :  { %v1866_v45 = vcvt.f32.s32 %v1865_v61 }
0x2704   :  { %1886 = vrot.lane.b32.xlu0 %v1884_v19, %s2384_s12 }
0x2705   :  { %v1869_v48 = vadd.s32 %v1868_v20, %v1866_v45 }
0x2707   :  { %1970 = vst.msk [vmem:[%s2896_s5 + $0xe] sm:$0x3] %vm344_vm7, %v1869_v48 }
0x2776   :  { %v1887_v22 = vpop.permute.xlu0 %1886 }
0x2777   :  { %1890 = vst.msk [vmem:[#allocation7 + $0xe] sm:$0x3] %vm356_vm2, %v1887_v22 }
0x2778   :  { %2359 = shalt.err (!%p2356_p5)
}
0x2779   :  { %s2387_s10 = smov 2  }
0x277a   :  { %1905 = dma.vmem_to_hbm [thread:$0]  %s1900_s9, 256, %s2895_s4, [#allocation4], %s2384_s12, %s2384_s12, %s2387_s10  }
0x277b   :  { %2372 = dma.done.wait [#allocation4], 256  }
0x277c   :  { %2373 = vsyncadd [#allocation4], 4294967040 }
0x277d   :  { %2374 = dma.done.wait [#allocation9], 32  }
0x277e   :  { %2375 = vsyncadd [#allocation9], 4294967264 }
0x277f   :  { %1926 = vsyncpa [#allocation3], 1 }
0x2780   :  { %1927 = vsyncpa [#allocation6], 1 }
0x2781   :  { %1928 = vsyncpa [#allocation4], 1 }
0x2782   :  { %1929 = vsyncpa [#allocation9], 1 }

</bundles_post_ra>
